<compile_context>
chip_gen: v6e
topology: v6e:2x2x1
jax: 0.10.0
libtpu: 0.0.40
codegen_flags: <defaults>
</compile_context>

<pallas_src>
import math
import functools

import jax
import jax.numpy as jnp
from jax import lax
from jax.experimental import pallas as pl
from jax.experimental.pallas import tpu as pltpu


def _smha_kernel(xqkv_ref, wqkv_ref, wo_ref, bo_ref, o_ref, *,
                 heads, head_dim, compute_dtype):
    """One grid step: a tile of G = bt_tile (b,t) slices.

    xqkv_ref : [3, G, N, C]  stacked Q/K/V inputs (io dtype)
    wqkv_ref : [H, 3, C, D]  per-head input-projection weights
                             (1/sqrt(D) already folded into the Q slice)
    wo_ref   : [H, D, C]     per-head fc_out weights
    bo_ref   : [1, C]        fc_out bias (f32)
    o_ref    : [G, N, C]
    """
    _, G, N, C = xqkv_ref.shape
    D = head_dim
    M = G * N

    xs = xqkv_ref[...].reshape(3, M, C)           # merge (G,N): non-minor, free
    if xs.dtype != compute_dtype:
        xs = xs.astype(compute_dtype)

    out = jnp.zeros((M, C), jnp.float32)
    for h in range(heads):                        # static unroll over heads
        w_h = wqkv_ref[h]                         # [3, C, D] — no lane slicing
        # Fused Q/K/V projection for this head: one batched MXU matmul.
        pkv = lax.dot_general(
            xs, w_h,
            dimension_numbers=(((2,), (1,)), ((0,), (0,))),
            preferred_element_type=jnp.float32)   # [3, M, D], f32 accumulation
        qh = pkv[0].astype(compute_dtype).reshape(G, N, D)
        kh = pkv[1].astype(compute_dtype).reshape(G, N, D)
        vh = pkv[2].astype(compute_dtype).reshape(G, N, D)

        # Batched attention over the whole (b,t) tile; softmax kept in f32.
        s = jnp.einsum('gnd,gmd->gnm', qh, kh,
                       preferred_element_type=jnp.float32)          # [G, N, N]
        s = s - jnp.max(s, axis=-1, keepdims=True)
        p = jnp.exp(s)
        p = p * pl.reciprocal(jnp.sum(p, axis=-1, keepdims=True), approx=True)
        ctx = jnp.einsum('gnm,gmd->gnd', p.astype(compute_dtype), vh,
                         preferred_element_type=jnp.float32)        # [G, N, D]

        # Per-head output projection, accumulated: no lane-dim concatenate.
        out = out + jnp.dot(ctx.reshape(M, D).astype(compute_dtype), wo_ref[h],
                            preferred_element_type=jnp.float32)

    out = out + bo_ref[...]                       # fc_out bias, broadcast [1, C]
    o_ref[...] = out.reshape(G, N, C).astype(o_ref.dtype)


def _tpu_vmem_and_cores():
    """(VMEM bytes per core, #TensorCores sharing the grid), with safe fallbacks."""
    vmem = None
    try:
        vmem = getattr(pltpu.get_tpu_info(), "vmem_capacity_bytes", None)
    except Exception:
        vmem = None
    kind = ""
    try:
        kind = jax.devices()[0].device_kind.lower()
    except Exception:
        pass
    multi_tc = any(tag in kind for tag in ("v7", "7x", "v4", "v3"))
    if not vmem:
        vmem = (64 if multi_tc else 128) * 1024 * 1024
    return int(vmem), (2 if multi_tc else 1)


def _pick_bt_tile(BT, N, C, in_itemsize, out_itemsize, vmem_limit_bytes, num_tc):
    """Pick the (b,t)-tile per grid step from an explicit VMEM budget.

    Per-(b,t)-row footprint:
      * double-buffered stacked-QKV input block + output block (raw bytes);
      * ~14 lane-padded (->128) f32 intermediates per row (xs cast, pkv, q/k/v,
        scores, probs, ctx, output accumulator) — with N<=8 each is one
        (8,128) f32 tile (4 KiB) per row; this padding, not the raw block,
        dominates VMEM for these D=8 / N=8 shapes.
    """
    sub_tiles = -(-N // 8)
    io = 2 * (3 * in_itemsize + out_itemsize) * N * C
    interm = 14 * sub_tiles * 8 * 128 * 4
    per_row = io + interm
    budget_rows = max(1, int(0.7 * vmem_limit_bytes) // per_row)

    # Review guidance: raw input block in the low-MiB range (2 MiB on v7x's
    # 64 MiB/TC, up to 4 MiB on v5e/v6e's 128 MiB).
    block_cap = (2 if num_tc > 1 else 4) * 1024 * 1024
    cap_rows = max(1, block_cap // (3 * N * C * in_itemsize))

    # >=4 steps on multi-TC parts (>=2 per core after the parallel split),
    # >=3 on single-TC parts purely for DMA/compute pipelining.  No forced
    # halving beyond that (it only doubles per-step overhead on v5e/v6e).
    min_steps = 4 if num_tc > 1 else 3
    tile = max(1, min(budget_rows, cap_rows, pl.cdiv(BT, min_steps)))

    # Prefer a nearby exact divisor of BT (no padding); otherwise keep the tile
    # and pad BT — avoids the bt_tile -> 1 cliff when BT is prime.
    div = tile
    while BT % div:
        div -= 1
    if 2 * div >= tile:
        tile = div
    return tile


def smha_forward(input_Q, input_K, input_V, params, heads, *,
                 bt_tile=None, use_bf16=False, out_dtype=None):
    """input_*: [B, N, T, C] (matches the PyTorch forward). Returns [B, N, T, C]."""
    B, N, T, C = input_Q.shape
    D = C // heads
    assert D * heads == C, "embed_size must be divisible by heads"
    wq, wk, wv, wo, bo = params            # wq/wk/wv: [C, H*D], wo: [H*D, C], bo: [1, C]
    BT = B * T

    io_dtype = jnp.bfloat16 if use_bf16 else input_Q.dtype
    compute_dtype = io_dtype               # MXU operand dtype; accumulation stays f32
    out_dtype = out_dtype or input_Q.dtype

    vmem_cap, num_tc = _tpu_vmem_and_cores()
    vmem_limit = max(32 * 1024 * 1024, min(64 * 1024 * 1024, int(0.75 * vmem_cap)))
    if num_tc > 1:                          # v7x: 64 MiB per TensorCore
        vmem_limit = min(vmem_limit, 48 * 1024 * 1024)

    if bt_tile is None:
        bt_tile = _pick_bt_tile(BT, N, C, jnp.dtype(io_dtype).itemsize,
                                jnp.dtype(out_dtype).itemsize, vmem_limit, num_tc)
    grid_steps = pl.cdiv(BT, bt_tile)
    BT_pad = grid_steps * bt_tile

    # [B,N,T,C] -> [B*T, N, C], stacked so the kernel reads one QKV stream.
    # TODO(synk): this relayout (and the inverse on the output) stays in XLA —
    # writing [B,N,T,C] directly would require a second-minor (T,N) transpose
    # inside the kernel, which Mosaic does not lower at these shapes.
    def to_btnc(x):
        return jnp.transpose(x, (0, 2, 1, 3)).reshape(BT, N, C)

    xqkv = jnp.stack([to_btnc(input_Q), to_btnc(input_K), to_btnc(input_V)], axis=0)
    xqkv = xqkv.astype(io_dtype)
    if BT_pad != BT:
        xqkv = jnp.pad(xqkv, ((0, 0), (0, BT_pad - BT), (0, 0), (0, 0)))

    # Per-head weight layout: [H, 3, C, D] / [H, D, C]; fold 1/sqrt(D) into Q.
    scale = 1.0 / math.sqrt(D)
    wq_h = jnp.transpose(wq.reshape(C, heads, D), (1, 0, 2)) * scale
    wk_h = jnp.transpose(wk.reshape(C, heads, D), (1, 0, 2))
    wv_h = jnp.transpose(wv.reshape(C, heads, D), (1, 0, 2))
    wqkv = jnp.stack([wq_h, wk_h, wv_h], axis=1).astype(io_dtype)   # [H, 3, C, D]
    wo_h = wo.reshape(heads, D, C).astype(io_dtype)                 # [H, D, C]
    bo_f32 = bo.astype(jnp.float32)

    # NOTE: if profiling still shows exposed DMA after the larger blocks, add
    # pipeline_mode=pl.Buffered(3) to x_spec (costs +1 input block of VMEM).
    x_spec = pl.BlockSpec((3, bt_tile, N, C), lambda i: (0, i, 0, 0))
    wqkv_spec = pl.BlockSpec((heads, 3, C, D), lambda i: (0, 0, 0, 0))
    wo_spec = pl.BlockSpec((heads, D, C), lambda i: (0, 0, 0))
    b_spec = pl.BlockSpec((1, C), lambda i: (0, 0))

    out = pl.pallas_call(
        functools.partial(_smha_kernel, heads=heads, head_dim=D,
                          compute_dtype=compute_dtype),
        out_shape=jax.ShapeDtypeStruct((BT_pad, N, C), out_dtype),
        grid=(grid_steps,),
        in_specs=[x_spec, wqkv_spec, wo_spec, b_spec],
        out_specs=pl.BlockSpec((bt_tile, N, C), lambda i: (i, 0, 0)),
        compiler_params=pltpu.CompilerParams(
            dimension_semantics=("parallel",),
            vmem_limit_bytes=int(vmem_limit),
        ),
    )(xqkv, wqkv, wo_h, bo_f32)

    out = out[:BT]
    return jnp.transpose(out.reshape(B, T, N, C), (0, 2, 1, 3))


def smha_reference(input_Q, input_K, input_V, params, heads):
    """Pure-JAX reference mirroring the PyTorch module exactly."""
    B, N, T, C = input_Q.shape
    D = C // heads
    wq, wk, wv, wo, bo = params

    def proj(x, w):  # [B,N,T,C] @ [C,H*D] -> [B, heads, T, N, D]
        y = jnp.einsum('bntc,ce->bnte', x, w).reshape(B, N, T, heads, D)
        return jnp.transpose(y, (0, 3, 2, 1, 4))

    Q, K, V = proj(input_Q, wq), proj(input_K, wk), proj(input_V, wv)
    scores = jnp.einsum('bhtnd,bhtmd->bhtnm', Q, K) / math.sqrt(D)
    attn = jax.nn.softmax(scores, axis=-1)
    ctx = jnp.einsum('bhtnm,bhtmd->bhtnd', attn, V)
    ctx = jnp.transpose(ctx, (0, 3, 2, 1, 4)).reshape(B, N, T, heads * D)
    return jnp.einsum('bntc,ce->bnte', ctx, wo) + bo[0]


if __name__ == "__main__":
    B, N, T = 2, 8, 8
    embed_size, heads = 32, 4
    head_dim = embed_size // heads

    key = jax.random.PRNGKey(0)
    k_q, k_k, k_v, k_wq, k_wk, k_wv, k_wo, k_bo = jax.random.split(key, 8)

    input_Q = jax.random.normal(k_q, (B, N, T, embed_size), jnp.float32)
    input_K = jax.random.normal(k_k, (B, N, T, embed_size), jnp.float32)
    input_V = jax.random.normal(k_v, (B, N, T, embed_size), jnp.float32)

    # Deterministic parameter init (stored as [in, out], i.e. torch weight.T).
    s_in = 1.0 / math.sqrt(embed_size)
    wq = jax.random.uniform(k_wq, (embed_size, heads * head_dim), jnp.float32, -s_in, s_in)
    wk = jax.random.uniform(k_wk, (embed_size, heads * head_dim), jnp.float32, -s_in, s_in)
    wv = jax.random.uniform(k_wv, (embed_size, heads * head_dim), jnp.float32, -s_in, s_in)
    wo = jax.random.uniform(k_wo, (heads * head_dim, embed_size), jnp.float32, -s_in, s_in)
    bo = jax.random.uniform(k_bo, (1, embed_size), jnp.float32, -s_in, s_in)
    params = (wq, wk, wv, wo, bo)

    ref = smha_reference(input_Q, input_K, input_V, params, heads)

    # f32 path: only the approx (EUP) reciprocal in the softmax denominator is
    # inexact, hence the 3e-3 tolerance.
    out = smha_forward(input_Q, input_K, input_V, params, heads)
    out = jax.block_until_ready(out)
    assert out.shape == (B, N, T, embed_size)
    err = float(jnp.max(jnp.abs(out - ref)))
    assert jnp.allclose(out, ref, atol=3e-3, rtol=3e-3), err

    # bf16 MXU-operand / bf16-HBM path (recommended on v6e/v7x); f32 accumulation
    # and f32 softmax, so only operand rounding widens the tolerance.
    out_bf = smha_forward(input_Q, input_K, input_V, params, heads, use_bf16=True)
    out_bf = jax.block_until_ready(out_bf)
    err_bf = float(jnp.max(jnp.abs(out_bf.astype(jnp.float32) - ref)))
    assert jnp.allclose(out_bf.astype(jnp.float32), ref, atol=1e-1, rtol=1e-1), err_bf

    print("KERNEL_OK")
</pallas_src>

<mosaic_0001>
module attributes {stable_mosaic.version = 11 : i64} {
  func.func @_smha_kernel(%arg0: i32, %arg1: memref<3x4x8x32xf32, #tpu.memory_space<vmem>>, %arg2: memref<4x3x32x8xf32, #tpu.memory_space<vmem>>, %arg3: memref<4x8x32xf32, #tpu.memory_space<vmem>>, %arg4: memref<1x32xf32, #tpu.memory_space<vmem>>, %arg5: memref<4x8x32xf32, #tpu.memory_space<vmem>>) attributes {dimension_semantics = [#tpu.dimension_semantics<parallel>], iteration_bounds = array<i64: 4>, scalar_prefetch = 0 : i64, scratch_operands = 0 : i64, tpu.core_type = #tpu.core_type<tc>, window_params = [{transform_indices = @transform_0, window_bounds = array<i64: 3, 4, 8, 32>}, {pipeline_mode = #tpu.pipeline_mode<synchronous>, transform_indices = @transform_1, window_bounds = array<i64: 4, 3, 32, 8>}, {pipeline_mode = #tpu.pipeline_mode<synchronous>, transform_indices = @transform_2, window_bounds = array<i64: 4, 8, 32>}, {pipeline_mode = #tpu.pipeline_mode<synchronous>, transform_indices = @transform_3, window_bounds = array<i64: 1, 32>}, {transform_indices = @transform_4, window_bounds = array<i64: 4, 8, 32>}]} {
    %c0 = arith.constant 0 : index
    %c0_0 = arith.constant 0 : index
    %c0_1 = arith.constant 0 : index
    %c0_2 = arith.constant 0 : index
    %0 = vector.load %arg1[%c0, %c0_0, %c0_1, %c0_2] : memref<3x4x8x32xf32, #tpu.memory_space<vmem>>, vector<3x4x8x32xf32>
    %1 = vector.shape_cast %0 : vector<3x4x8x32xf32> to vector<3x32x32xf32>
    %cst = arith.constant 0.000000e+00 : f32
    %2 = vector.broadcast %cst : f32 to vector<32x32xf32>
    %c0_3 = arith.constant 0 : index
    %c0_4 = arith.constant 0 : index
    %c0_5 = arith.constant 0 : index
    %c0_6 = arith.constant 0 : index
    %3 = vector.load %arg2[%c0_3, %c0_4, %c0_5, %c0_6] : memref<4x3x32x8xf32, #tpu.memory_space<vmem>>, vector<1x3x32x8xf32>
    %4 = vector.shape_cast %3 : vector<1x3x32x8xf32> to vector<3x32x8xf32>
    %cst_7 = arith.constant dense<0.000000e+00> : vector<3x32x8xf32>
    %5 = tpu.matmul %1, %4, %cst_7 {dimension_numbers = #tpu.dot_dimension_numbers<[2], [1], [1], [2], [0, 0, 0, 1, 1, 2], [0], [0]>} : vector<3x32x32xf32>, vector<3x32x8xf32>, vector<3x32x8xf32> -> vector<3x32x8xf32>
    %6 = vector.extract_strided_slice %5 {offsets = [0, 0, 0], sizes = [1, 32, 8], strides = [1, 1, 1]} : vector<3x32x8xf32> to vector<1x32x8xf32>
    %7 = vector.shape_cast %6 : vector<1x32x8xf32> to vector<32x8xf32>
    %8 = vector.shape_cast %7 : vector<32x8xf32> to vector<4x8x8xf32>
    %9 = vector.extract_strided_slice %5 {offsets = [1, 0, 0], sizes = [1, 32, 8], strides = [1, 1, 1]} : vector<3x32x8xf32> to vector<1x32x8xf32>
    %10 = vector.shape_cast %9 : vector<1x32x8xf32> to vector<32x8xf32>
    %11 = vector.shape_cast %10 : vector<32x8xf32> to vector<4x8x8xf32>
    %12 = vector.extract_strided_slice %5 {offsets = [2, 0, 0], sizes = [1, 32, 8], strides = [1, 1, 1]} : vector<3x32x8xf32> to vector<1x32x8xf32>
    %13 = vector.shape_cast %12 : vector<1x32x8xf32> to vector<32x8xf32>
    %14 = vector.shape_cast %13 : vector<32x8xf32> to vector<4x8x8xf32>
    "tpu.trace_start"() <{level = 10 : i32, message = "gnd,gmd->gnm"}> : () -> ()
    %cst_8 = arith.constant dense<0.000000e+00> : vector<4x8x8xf32>
    %15 = tpu.matmul %8, %11, %cst_8 {dimension_numbers = #tpu.dot_dimension_numbers<[2], [2], [1], [1], [0, 0, 0, 1, 1, 1], [0], [0]>} : vector<4x8x8xf32>, vector<4x8x8xf32>, vector<4x8x8xf32> -> vector<4x8x8xf32>
    "tpu.trace_stop"() : () -> ()
    %cst_9 = arith.constant dense<0xFF800000> : vector<4x8xf32>
    %16 = vector.multi_reduction <maximumf>, %15, %cst_9 [2] : vector<4x8x8xf32> to vector<4x8xf32>
    %17 = vector.shape_cast %16 : vector<4x8xf32> to vector<4x8x1xf32>
    %18 = vector.broadcast %17 : vector<4x8x1xf32> to vector<4x8x8xf32>
    %19 = arith.subf %15, %18 : vector<4x8x8xf32>
    %20 = math.exp %19 : vector<4x8x8xf32>
    %cst_10 = arith.constant dense<0.000000e+00> : vector<4x8xf32>
    %21 = vector.multi_reduction <add>, %20, %cst_10 [2] : vector<4x8x8xf32> to vector<4x8xf32>
    %22 = vector.shape_cast %21 : vector<4x8xf32> to vector<4x8x1xf32>
    %23 = tpu.reciprocal %22 {approx = true} : vector<4x8x1xf32> -> vector<4x8x1xf32>
    %24 = vector.broadcast %23 : vector<4x8x1xf32> to vector<4x8x8xf32>
    %25 = arith.mulf %20, %24 : vector<4x8x8xf32>
    "tpu.trace_start"() <{level = 10 : i32, message = "gnm,gmd->gnd"}> : () -> ()
    %cst_11 = arith.constant dense<0.000000e+00> : vector<4x8x8xf32>
    %26 = tpu.matmul %25, %14, %cst_11 {dimension_numbers = #tpu.dot_dimension_numbers<[2], [1], [1], [2], [0, 0, 0, 1, 1, 2], [0], [0]>} : vector<4x8x8xf32>, vector<4x8x8xf32>, vector<4x8x8xf32> -> vector<4x8x8xf32>
    "tpu.trace_stop"() : () -> ()
    %27 = vector.shape_cast %26 : vector<4x8x8xf32> to vector<32x8xf32>
    %c0_12 = arith.constant 0 : index
    %c0_13 = arith.constant 0 : index
    %c0_14 = arith.constant 0 : index
    %28 = vector.load %arg3[%c0_12, %c0_13, %c0_14] : memref<4x8x32xf32, #tpu.memory_space<vmem>>, vector<1x8x32xf32>
    %29 = vector.shape_cast %28 : vector<1x8x32xf32> to vector<8x32xf32>
    %cst_15 = arith.constant dense<0.000000e+00> : vector<32x32xf32>
    %30 = tpu.matmul %27, %29, %cst_15 {dimension_numbers = #tpu.dot_dimension_numbers<[1], [0], [0], [1], [0, 0, 1, 1], [], []>} : vector<32x8xf32>, vector<8x32xf32>, vector<32x32xf32> -> vector<32x32xf32>
    %31 = arith.addf %2, %30 : vector<32x32xf32>
    %c1 = arith.constant 1 : index
    %c0_16 = arith.constant 0 : index
    %c0_17 = arith.constant 0 : index
    %c0_18 = arith.constant 0 : index
    %32 = vector.load %arg2[%c1, %c0_16, %c0_17, %c0_18] : memref<4x3x32x8xf32, #tpu.memory_space<vmem>>, vector<1x3x32x8xf32>
    %33 = vector.shape_cast %32 : vector<1x3x32x8xf32> to vector<3x32x8xf32>
    %cst_19 = arith.constant dense<0.000000e+00> : vector<3x32x8xf32>
    %34 = tpu.matmul %1, %33, %cst_19 {dimension_numbers = #tpu.dot_dimension_numbers<[2], [1], [1], [2], [0, 0, 0, 1, 1, 2], [0], [0]>} : vector<3x32x32xf32>, vector<3x32x8xf32>, vector<3x32x8xf32> -> vector<3x32x8xf32>
    %35 = vector.extract_strided_slice %34 {offsets = [0, 0, 0], sizes = [1, 32, 8], strides = [1, 1, 1]} : vector<3x32x8xf32> to vector<1x32x8xf32>
    %36 = vector.shape_cast %35 : vector<1x32x8xf32> to vector<32x8xf32>
    %37 = vector.shape_cast %36 : vector<32x8xf32> to vector<4x8x8xf32>
    %38 = vector.extract_strided_slice %34 {offsets = [1, 0, 0], sizes = [1, 32, 8], strides = [1, 1, 1]} : vector<3x32x8xf32> to vector<1x32x8xf32>
    %39 = vector.shape_cast %38 : vector<1x32x8xf32> to vector<32x8xf32>
    %40 = vector.shape_cast %39 : vector<32x8xf32> to vector<4x8x8xf32>
    %41 = vector.extract_strided_slice %34 {offsets = [2, 0, 0], sizes = [1, 32, 8], strides = [1, 1, 1]} : vector<3x32x8xf32> to vector<1x32x8xf32>
    %42 = vector.shape_cast %41 : vector<1x32x8xf32> to vector<32x8xf32>
    %43 = vector.shape_cast %42 : vector<32x8xf32> to vector<4x8x8xf32>
    "tpu.trace_start"() <{level = 10 : i32, message = "gnd,gmd->gnm"}> : () -> ()
    %cst_20 = arith.constant dense<0.000000e+00> : vector<4x8x8xf32>
    %44 = tpu.matmul %37, %40, %cst_20 {dimension_numbers = #tpu.dot_dimension_numbers<[2], [2], [1], [1], [0, 0, 0, 1, 1, 1], [0], [0]>} : vector<4x8x8xf32>, vector<4x8x8xf32>, vector<4x8x8xf32> -> vector<4x8x8xf32>
    "tpu.trace_stop"() : () -> ()
    %cst_21 = arith.constant dense<0xFF800000> : vector<4x8xf32>
    %45 = vector.multi_reduction <maximumf>, %44, %cst_21 [2] : vector<4x8x8xf32> to vector<4x8xf32>
    %46 = vector.shape_cast %45 : vector<4x8xf32> to vector<4x8x1xf32>
    %47 = vector.broadcast %46 : vector<4x8x1xf32> to vector<4x8x8xf32>
    %48 = arith.subf %44, %47 : vector<4x8x8xf32>
    %49 = math.exp %48 : vector<4x8x8xf32>
    %cst_22 = arith.constant dense<0.000000e+00> : vector<4x8xf32>
    %50 = vector.multi_reduction <add>, %49, %cst_22 [2] : vector<4x8x8xf32> to vector<4x8xf32>
    %51 = vector.shape_cast %50 : vector<4x8xf32> to vector<4x8x1xf32>
    %52 = tpu.reciprocal %51 {approx = true} : vector<4x8x1xf32> -> vector<4x8x1xf32>
    %53 = vector.broadcast %52 : vector<4x8x1xf32> to vector<4x8x8xf32>
    %54 = arith.mulf %49, %53 : vector<4x8x8xf32>
    "tpu.trace_start"() <{level = 10 : i32, message = "gnm,gmd->gnd"}> : () -> ()
    %cst_23 = arith.constant dense<0.000000e+00> : vector<4x8x8xf32>
    %55 = tpu.matmul %54, %43, %cst_23 {dimension_numbers = #tpu.dot_dimension_numbers<[2], [1], [1], [2], [0, 0, 0, 1, 1, 2], [0], [0]>} : vector<4x8x8xf32>, vector<4x8x8xf32>, vector<4x8x8xf32> -> vector<4x8x8xf32>
    "tpu.trace_stop"() : () -> ()
    %56 = vector.shape_cast %55 : vector<4x8x8xf32> to vector<32x8xf32>
    %c1_24 = arith.constant 1 : index
    %c0_25 = arith.constant 0 : index
    %c0_26 = arith.constant 0 : index
    %57 = vector.load %arg3[%c1_24, %c0_25, %c0_26] : memref<4x8x32xf32, #tpu.memory_space<vmem>>, vector<1x8x32xf32>
    %58 = vector.shape_cast %57 : vector<1x8x32xf32> to vector<8x32xf32>
    %cst_27 = arith.constant dense<0.000000e+00> : vector<32x32xf32>
    %59 = tpu.matmul %56, %58, %cst_27 {dimension_numbers = #tpu.dot_dimension_numbers<[1], [0], [0], [1], [0, 0, 1, 1], [], []>} : vector<32x8xf32>, vector<8x32xf32>, vector<32x32xf32> -> vector<32x32xf32>
    %60 = arith.addf %31, %59 : vector<32x32xf32>
    %c2 = arith.constant 2 : index
    %c0_28 = arith.constant 0 : index
    %c0_29 = arith.constant 0 : index
    %c0_30 = arith.constant 0 : index
    %61 = vector.load %arg2[%c2, %c0_28, %c0_29, %c0_30] : memref<4x3x32x8xf32, #tpu.memory_space<vmem>>, vector<1x3x32x8xf32>
    %62 = vector.shape_cast %61 : vector<1x3x32x8xf32> to vector<3x32x8xf32>
    %cst_31 = arith.constant dense<0.000000e+00> : vector<3x32x8xf32>
    %63 = tpu.matmul %1, %62, %cst_31 {dimension_numbers = #tpu.dot_dimension_numbers<[2], [1], [1], [2], [0, 0, 0, 1, 1, 2], [0], [0]>} : vector<3x32x32xf32>, vector<3x32x8xf32>, vector<3x32x8xf32> -> vector<3x32x8xf32>
    %64 = vector.extract_strided_slice %63 {offsets = [0, 0, 0], sizes = [1, 32, 8], strides = [1, 1, 1]} : vector<3x32x8xf32> to vector<1x32x8xf32>
    %65 = vector.shape_cast %64 : vector<1x32x8xf32> to vector<32x8xf32>
    %66 = vector.shape_cast %65 : vector<32x8xf32> to vector<4x8x8xf32>
    %67 = vector.extract_strided_slice %63 {offsets = [1, 0, 0], sizes = [1, 32, 8], strides = [1, 1, 1]} : vector<3x32x8xf32> to vector<1x32x8xf32>
    %68 = vector.shape_cast %67 : vector<1x32x8xf32> to vector<32x8xf32>
    %69 = vector.shape_cast %68 : vector<32x8xf32> to vector<4x8x8xf32>
    %70 = vector.extract_strided_slice %63 {offsets = [2, 0, 0], sizes = [1, 32, 8], strides = [1, 1, 1]} : vector<3x32x8xf32> to vector<1x32x8xf32>
    %71 = vector.shape_cast %70 : vector<1x32x8xf32> to vector<32x8xf32>
    %72 = vector.shape_cast %71 : vector<32x8xf32> to vector<4x8x8xf32>
    "tpu.trace_start"() <{level = 10 : i32, message = "gnd,gmd->gnm"}> : () -> ()
    %cst_32 = arith.constant dense<0.000000e+00> : vector<4x8x8xf32>
    %73 = tpu.matmul %66, %69, %cst_32 {dimension_numbers = #tpu.dot_dimension_numbers<[2], [2], [1], [1], [0, 0, 0, 1, 1, 1], [0], [0]>} : vector<4x8x8xf32>, vector<4x8x8xf32>, vector<4x8x8xf32> -> vector<4x8x8xf32>
    "tpu.trace_stop"() : () -> ()
    %cst_33 = arith.constant dense<0xFF800000> : vector<4x8xf32>
    %74 = vector.multi_reduction <maximumf>, %73, %cst_33 [2] : vector<4x8x8xf32> to vector<4x8xf32>
    %75 = vector.shape_cast %74 : vector<4x8xf32> to vector<4x8x1xf32>
    %76 = vector.broadcast %75 : vector<4x8x1xf32> to vector<4x8x8xf32>
    %77 = arith.subf %73, %76 : vector<4x8x8xf32>
    %78 = math.exp %77 : vector<4x8x8xf32>
    %cst_34 = arith.constant dense<0.000000e+00> : vector<4x8xf32>
    %79 = vector.multi_reduction <add>, %78, %cst_34 [2] : vector<4x8x8xf32> to vector<4x8xf32>
    %80 = vector.shape_cast %79 : vector<4x8xf32> to vector<4x8x1xf32>
    %81 = tpu.reciprocal %80 {approx = true} : vector<4x8x1xf32> -> vector<4x8x1xf32>
    %82 = vector.broadcast %81 : vector<4x8x1xf32> to vector<4x8x8xf32>
    %83 = arith.mulf %78, %82 : vector<4x8x8xf32>
    "tpu.trace_start"() <{level = 10 : i32, message = "gnm,gmd->gnd"}> : () -> ()
    %cst_35 = arith.constant dense<0.000000e+00> : vector<4x8x8xf32>
    %84 = tpu.matmul %83, %72, %cst_35 {dimension_numbers = #tpu.dot_dimension_numbers<[2], [1], [1], [2], [0, 0, 0, 1, 1, 2], [0], [0]>} : vector<4x8x8xf32>, vector<4x8x8xf32>, vector<4x8x8xf32> -> vector<4x8x8xf32>
    "tpu.trace_stop"() : () -> ()
    %85 = vector.shape_cast %84 : vector<4x8x8xf32> to vector<32x8xf32>
    %c2_36 = arith.constant 2 : index
    %c0_37 = arith.constant 0 : index
    %c0_38 = arith.constant 0 : index
    %86 = vector.load %arg3[%c2_36, %c0_37, %c0_38] : memref<4x8x32xf32, #tpu.memory_space<vmem>>, vector<1x8x32xf32>
    %87 = vector.shape_cast %86 : vector<1x8x32xf32> to vector<8x32xf32>
    %cst_39 = arith.constant dense<0.000000e+00> : vector<32x32xf32>
    %88 = tpu.matmul %85, %87, %cst_39 {dimension_numbers = #tpu.dot_dimension_numbers<[1], [0], [0], [1], [0, 0, 1, 1], [], []>} : vector<32x8xf32>, vector<8x32xf32>, vector<32x32xf32> -> vector<32x32xf32>
    %89 = arith.addf %60, %88 : vector<32x32xf32>
    %c3 = arith.constant 3 : index
    %c0_40 = arith.constant 0 : index
    %c0_41 = arith.constant 0 : index
    %c0_42 = arith.constant 0 : index
    %90 = vector.load %arg2[%c3, %c0_40, %c0_41, %c0_42] : memref<4x3x32x8xf32, #tpu.memory_space<vmem>>, vector<1x3x32x8xf32>
    %91 = vector.shape_cast %90 : vector<1x3x32x8xf32> to vector<3x32x8xf32>
    %cst_43 = arith.constant dense<0.000000e+00> : vector<3x32x8xf32>
    %92 = tpu.matmul %1, %91, %cst_43 {dimension_numbers = #tpu.dot_dimension_numbers<[2], [1], [1], [2], [0, 0, 0, 1, 1, 2], [0], [0]>} : vector<3x32x32xf32>, vector<3x32x8xf32>, vector<3x32x8xf32> -> vector<3x32x8xf32>
    %93 = vector.extract_strided_slice %92 {offsets = [0, 0, 0], sizes = [1, 32, 8], strides = [1, 1, 1]} : vector<3x32x8xf32> to vector<1x32x8xf32>
    %94 = vector.shape_cast %93 : vector<1x32x8xf32> to vector<32x8xf32>
    %95 = vector.shape_cast %94 : vector<32x8xf32> to vector<4x8x8xf32>
    %96 = vector.extract_strided_slice %92 {offsets = [1, 0, 0], sizes = [1, 32, 8], strides = [1, 1, 1]} : vector<3x32x8xf32> to vector<1x32x8xf32>
    %97 = vector.shape_cast %96 : vector<1x32x8xf32> to vector<32x8xf32>
    %98 = vector.shape_cast %97 : vector<32x8xf32> to vector<4x8x8xf32>
    %99 = vector.extract_strided_slice %92 {offsets = [2, 0, 0], sizes = [1, 32, 8], strides = [1, 1, 1]} : vector<3x32x8xf32> to vector<1x32x8xf32>
    %100 = vector.shape_cast %99 : vector<1x32x8xf32> to vector<32x8xf32>
    %101 = vector.shape_cast %100 : vector<32x8xf32> to vector<4x8x8xf32>
    "tpu.trace_start"() <{level = 10 : i32, message = "gnd,gmd->gnm"}> : () -> ()
    %cst_44 = arith.constant dense<0.000000e+00> : vector<4x8x8xf32>
    %102 = tpu.matmul %95, %98, %cst_44 {dimension_numbers = #tpu.dot_dimension_numbers<[2], [2], [1], [1], [0, 0, 0, 1, 1, 1], [0], [0]>} : vector<4x8x8xf32>, vector<4x8x8xf32>, vector<4x8x8xf32> -> vector<4x8x8xf32>
    "tpu.trace_stop"() : () -> ()
    %cst_45 = arith.constant dense<0xFF800000> : vector<4x8xf32>
    %103 = vector.multi_reduction <maximumf>, %102, %cst_45 [2] : vector<4x8x8xf32> to vector<4x8xf32>
    %104 = vector.shape_cast %103 : vector<4x8xf32> to vector<4x8x1xf32>
    %105 = vector.broadcast %104 : vector<4x8x1xf32> to vector<4x8x8xf32>
    %106 = arith.subf %102, %105 : vector<4x8x8xf32>
    %107 = math.exp %106 : vector<4x8x8xf32>
    %cst_46 = arith.constant dense<0.000000e+00> : vector<4x8xf32>
    %108 = vector.multi_reduction <add>, %107, %cst_46 [2] : vector<4x8x8xf32> to vector<4x8xf32>
    %109 = vector.shape_cast %108 : vector<4x8xf32> to vector<4x8x1xf32>
    %110 = tpu.reciprocal %109 {approx = true} : vector<4x8x1xf32> -> vector<4x8x1xf32>
    %111 = vector.broadcast %110 : vector<4x8x1xf32> to vector<4x8x8xf32>
    %112 = arith.mulf %107, %111 : vector<4x8x8xf32>
    "tpu.trace_start"() <{level = 10 : i32, message = "gnm,gmd->gnd"}> : () -> ()
    %cst_47 = arith.constant dense<0.000000e+00> : vector<4x8x8xf32>
    %113 = tpu.matmul %112, %101, %cst_47 {dimension_numbers = #tpu.dot_dimension_numbers<[2], [1], [1], [2], [0, 0, 0, 1, 1, 2], [0], [0]>} : vector<4x8x8xf32>, vector<4x8x8xf32>, vector<4x8x8xf32> -> vector<4x8x8xf32>
    "tpu.trace_stop"() : () -> ()
    %114 = vector.shape_cast %113 : vector<4x8x8xf32> to vector<32x8xf32>
    %c3_48 = arith.constant 3 : index
    %c0_49 = arith.constant 0 : index
    %c0_50 = arith.constant 0 : index
    %115 = vector.load %arg3[%c3_48, %c0_49, %c0_50] : memref<4x8x32xf32, #tpu.memory_space<vmem>>, vector<1x8x32xf32>
    %116 = vector.shape_cast %115 : vector<1x8x32xf32> to vector<8x32xf32>
    %cst_51 = arith.constant dense<0.000000e+00> : vector<32x32xf32>
    %117 = tpu.matmul %114, %116, %cst_51 {dimension_numbers = #tpu.dot_dimension_numbers<[1], [0], [0], [1], [0, 0, 1, 1], [], []>} : vector<32x8xf32>, vector<8x32xf32>, vector<32x32xf32> -> vector<32x32xf32>
    %118 = arith.addf %89, %117 : vector<32x32xf32>
    %c0_52 = arith.constant 0 : index
    %c0_53 = arith.constant 0 : index
    %119 = vector.load %arg4[%c0_52, %c0_53] : memref<1x32xf32, #tpu.memory_space<vmem>>, vector<1x32xf32>
    %120 = vector.broadcast %119 : vector<1x32xf32> to vector<32x32xf32>
    %121 = arith.addf %118, %120 : vector<32x32xf32>
    %122 = vector.shape_cast %121 : vector<32x32xf32> to vector<4x8x32xf32>
    %c0_54 = arith.constant 0 : index
    %c0_55 = arith.constant 0 : index
    %c0_56 = arith.constant 0 : index
    %123 = vector.load %arg5[%c0_54, %c0_55, %c0_56] : memref<4x8x32xf32, #tpu.memory_space<vmem>>, vector<4x8x32xf32>
    tpu.vector_store %arg5[%c0_54, %c0_55, %c0_56], %122 {strides = array<i32>} : memref<4x8x32xf32, #tpu.memory_space<vmem>>, vector<4x8x32xf32>,
    return
  }
  func.func @transform_0(%arg0: i32) -> (i32, i32, i32, i32) {
    %c0_i32 = arith.constant 0 : i32
    %c0_i32_0 = arith.constant 0 : i32
    %c0_i32_1 = arith.constant 0 : i32
    %c0_i32_2 = arith.constant 0 : i32
    return %c0_i32, %arg0, %c0_i32_0, %c0_i32_1 : i32, i32, i32, i32
  }
  func.func @transform_1(%arg0: i32) -> (i32, i32, i32, i32) {
    %c0_i32 = arith.constant 0 : i32
    %c0_i32_0 = arith.constant 0 : i32
    %c0_i32_1 = arith.constant 0 : i32
    %c0_i32_2 = arith.constant 0 : i32
    %c0_i32_3 = arith.constant 0 : i32
    return %c0_i32, %c0_i32_0, %c0_i32_1, %c0_i32_2 : i32, i32, i32, i32
  }
  func.func @transform_2(%arg0: i32) -> (i32, i32, i32) {
    %c0_i32 = arith.constant 0 : i32
    %c0_i32_0 = arith.constant 0 : i32
    %c0_i32_1 = arith.constant 0 : i32
    %c0_i32_2 = arith.constant 0 : i32
    return %c0_i32, %c0_i32_0, %c0_i32_1 : i32, i32, i32
  }
  func.func @transform_3(%arg0: i32) -> (i32, i32) {
    %c0_i32 = arith.constant 0 : i32
    %c0_i32_0 = arith.constant 0 : i32
    %c0_i32_1 = arith.constant 0 : i32
    return %c0_i32, %c0_i32_0 : i32, i32
  }
  func.func @transform_4(%arg0: i32) -> (i32, i32, i32) {
    %c0_i32 = arith.constant 0 : i32
    %c0_i32_0 = arith.constant 0 : i32
    %c0_i32_1 = arith.constant 0 : i32
    return %arg0, %c0_i32, %c0_i32_0 : i32, i32, i32
  }
}

</mosaic_0001>

<bundles_post_ra>
// kernel: tpu_custom_call.1
= control target key start
LH: loop header
LB: loop body
LE: loop exit
PB: predicated region body
PF: predicated region fallthrough
CT: control target
= control target key end

     0   :  { %9 = vsyncpa [#allocation4], 0  ;;  %s6029_s0 = inlined_call_operand.vmem [shape: f32[3,16,8,32], index: 0, kind: input, shape index: {}]   ;;  %s6030_s1 = inlined_call_operand.vmem [shape: f32[4,3,32,8], index: 1, kind: input, shape index: {}]   ;;  %s6031_s2 = inlined_call_operand.vmem [shape: f32[4,8,32], index: 2, kind: input, shape index: {}]   ;;  %s6032_s3 = inlined_call_operand.vmem [shape: f32[1,32], index: 3, kind: input, shape index: {}]   ;;  %s6033_s4 = inlined_call_operand.hbm [shape: f32[16,8,32], index: 4, kind: output, shape index: {}]  }
   0x1   :  { %11 = vsyncpa [#allocation4 + $0x1], 0  ;;  %s5372_s15 = smov 0   ;;  %s5374_s16 = smov 0  }
   0x2   :  { %s5376_s17 = smov 0   ;;  %s5378_s18 = smov 0  }
   0x3 LB: > { %s4458_s19 = sadd.s32 4294967295, %s5340_s18   ;;  %s4459_s20 = sadd.s32 4294967294, %s5340_s18   ;;  %s5340_s18 = sphi %s5378_s18, %s6039_s18   ;;  %s5336_s17 = sphi %s5376_s17, %s6038_s17   ;;  %s5332_s16 = sphi %s5374_s16, %s6037_s16   ;;  %s5328_s15 = sphi %s5372_s15, %s6036_s15  }
   0x4   : > { %s5395_s21 = sadd.s32 1, %s5340_s18   ;;  %s24_s22 = sadd.s32 1, %s5336_s17 }
   0x5   : > { %s21_s23 = ssub.s32 %s5340_s18, %s5395_s21  ;;  %p31_p0 = scmp.ne.s32.totalorder %s5336_s17, %s5332_s16 }
   0x6   : > { %p22_p1 = scmp.eq.s32.totalorder %s21_s23, 0  ;;  %p32_p2 = scmp.eq.s32.totalorder %s5340_s18, 0 }
   0x7   : > { %p124_p3 = scmp.eq.s32.totalorder %s4458_s19, 3  ;;  %p129_p4 = scmp.ne.s32.totalorder %s5332_s16, %s5328_s15 }
   0x8   : > { %s5408_s24 = scalar_select %p22_p1, %s5336_s17, %s24_s22  }
   0x9   : > { %p33_p5 = por %p32_p2, %p31_p0  ;;  %p5410_p6 = por %p124_p3, %p31_p0 }
   0xa   : > { %p130_p7 = scmp.eq.s32.totalorder %s4459_s20, 3  ;;  %p4461_p9 = scmp.ge.s32.totalorder %s5340_s18, 4 }
   0xc   : > { %p5414_p8 = por %p130_p7, %p129_p4  ;;  %155 = sbr.rel (%p4461_p9) target bundleno = 28 (0x1c), region = 28 }
  0x11   : > { %158 = sbr.rel (!%p33_p5) target bundleno = 28 (0x1c), region = 32  ;;  %s160_s27 = sand.u32 (%p33_p5), 1, %s5336_s17  }
  0x12   : > { %s4623_s28 = sshll.u32 (%p33_p5), %s5340_s18, 5  ;;  %s5165_s29 = smul.u32 (%p33_p5), 96, %s160_s27 }
  0x13   : > { %s165_s6 = scalar_lea.vmem (%p33_p5), %s6029_s0, %s4623_s28 }
  0x14   : > { %v216_v0 = vld [vmem:[%s165_s6] sm:$0xff] (%p33_p5)  ;;  %v218_v1 = vld [vmem:[%s165_s6 + $0x8] sm:$0xff] (%p33_p5)  ;;  %v220_v2 = vld [vmem:[%s165_s6 + $0x10] sm:$0xff] (%p33_p5)  ;;  %s162_s7 = scalar_lea.vmem (%p33_p5), [#allocation2], %s5165_s29 }
  0x15   : > { %v222_v3 = vld [vmem:[%s165_s6 + $0x18] sm:$0xff] (%p33_p5)  ;;  %v224_v4 = vld [vmem:[%s165_s6 + $0x80] sm:$0xff] (%p33_p5)  ;;  %v226_v5 = vld [vmem:[%s165_s6 + $0x88] sm:$0xff] (%p33_p5)  ;;  %217 = vst [vmem:[%s162_s7] sm:$0xff] (%p33_p5), %v216_v0 }
  0x16   : > { %219 = vst [vmem:[%s162_s7 + $0x8] sm:$0xff] %v218_v1  ;;  %221 = vst [vmem:[%s162_s7 + $0x10] sm:$0xff] %v220_v2  ;;  %v228_v6 = vld [vmem:[%s165_s6 + $0x90] sm:$0xff]  ;;  %v230_v7 = vld [vmem:[%s165_s6 + $0x98] sm:$0xff] }
  0x17   : > { %223 = vst [vmem:[%s162_s7 + $0x18] sm:$0xff] %v222_v3  ;;  %225 = vst [vmem:[%s162_s7 + $0x20] sm:$0xff] %v224_v4  ;;  %v232_v8 = vld [vmem:[%s165_s6 + $0x100] sm:$0xff]  ;;  %v234_v9 = vld [vmem:[%s165_s6 + $0x108] sm:$0xff] }
  0x18   : > { %227 = vst [vmem:[%s162_s7 + $0x28] sm:$0xff] %v226_v5  ;;  %229 = vst [vmem:[%s162_s7 + $0x30] sm:$0xff] %v228_v6  ;;  %v236_v10 = vld [vmem:[%s165_s6 + $0x110] sm:$0xff]  ;;  %v238_v11 = vld [vmem:[%s165_s6 + $0x118] sm:$0xff] }
  0x19   : > { %231 = vst [vmem:[%s162_s7 + $0x38] sm:$0xff] %v230_v7  ;;  %233 = vst [vmem:[%s162_s7 + $0x40] sm:$0xff] %v232_v8 }
  0x1a   : > { %235 = vst [vmem:[%s162_s7 + $0x48] sm:$0xff] %v234_v9  ;;  %237 = vst [vmem:[%s162_s7 + $0x50] sm:$0xff] %v236_v10 }
  0x1b   : > { %239 = vst [vmem:[%s162_s7 + $0x58] sm:$0xff] %v238_v11 }
  0x1c PF: > { %p4464_p10 = scmp.ge.s32.totalorder %s5340_s18, 1  ;;  %p244_p11 = scmp.lt.s32.totalorder %s5340_s18, 5 }
  0x1e   : > { %p245_p12 = pnand %p4464_p10, %p244_p11 }
  0x1f   : > { %s5436_s14 = sand.u32 (!%p245_p12), 1, %s5332_s16   ;;  %s4624_s12 = sshll.u32 (!%p245_p12), %s4458_s19, 9 }
  0x20   : > { %248 = sbr.rel (%p245_p12) target bundleno = 3699 (0xe73), region = 70  ;;  %s4465_s6 = sshll.u32 (!%p245_p12), %s5436_s14, 5 }
  0x21   : > { %s5166_s23 = smul.u32 (!%p245_p12), 96, %s5436_s14  ;;  %s275_s10 = scalar_lea.vmem (!%p245_p12), [#allocation3], %s4465_s6 }
  0x22   : > { %s4391_s11 = sshll.u32 (!%p245_p12), %s275_s10, 4  ;;  %s5983_s22 = scalar_lea.hbm (!%p245_p12), %s6033_s4, %s4624_s12  ;;  %s5985_s11 = int_to_ptr.vmem [resolvable:$true] %s4391_s11 }
  0x23   : > { %s5454_s9 = scalar_lea.vmem (!%p245_p12), [#allocation2], %s5166_s23  ;;  %s4378_s19 = scalar_lea.sflag (!%p245_p12), [#allocation4], %s5436_s14 }
  0x24   : > { %s5280_s23 = scalar_lea.vmem (!%p245_p12), %s5985_s11, 512  ;;  %s5344_s27 = smov (!%p245_p12), [#allocation3]  }
  0x25   : > { %v297_v12 = vld [vmem:[%s6030_s1 + $0x38] sm:$0xff]  ;;  %v296_v14 = vld [vmem:[%s6030_s1 + $0x30] sm:$0xff]  ;;  %v295_v16 = vld [vmem:[%s6030_s1 + $0x28] sm:$0xff]  ;;  %vm302_vm0 = vcmask 261120   ;;  %v5342_v32 = vmov 0.0   ;;  %vm5343_vm1 = vmmov 0   ;;  %p5281_p13 = scmp.ne.s32.totalorder %s5985_s11, %s5280_s23 }
  0x26   : > { %v293_v13 = vld [vmem:[%s6030_s1 + $0x18] sm:$0xff]  ;;  %4819 = vmatprep.subr.mxu1 %v297_v12  ;;  %v292_v15 = vld [vmem:[%s6030_s1 + $0x10] sm:$0xff]  ;;  %v291_v17 = vld [vmem:[%s6030_s1 + $0x8] sm:$0xff]  ;;  %vm594_vm2 = vcmask 64512   ;;  %s5284_s28 = sshll.u32 %s5344_s27, 4  ;;  %s5285_s28 = int_to_ptr.vmem [resolvable:$false] %s5284_s28 }
  0x27   : > { %4805 = vmatprep.subr.mxu0 %v293_v13  ;;  %4820 = vmatpush3.msra.mxu1 %v297_v12  ;;  %v294_v18 = vld [vmem:[%s6030_s1 + $0x20] sm:$0xff]  ;;  %v5463_v22 = vld [vmem:[%s5454_s9 + $0x28] sm:$0xff]  ;;  %v5471_v24 = vld [vmem:[%s5454_s9 + $0x30] sm:$0xff]  ;;  %p5282_p0 = pnand %p5281_p13, %p5410_p6  ;;  %s5286_s29 = scalar_lea.vmem %s5285_s28, 1024 }
  0x28   : > { %4806 = vmatpush3.msra.mxu0 %v293_v13  ;;  %4821 = vmatprep.subr.mxu1 %v296_v14  ;;  %v290_v19 = vld [vmem:[%s6030_s1] sm:$0xff]  ;;  %v5466_v23 = vld [vmem:[%s5454_s9 + $0x8] sm:$0xff]  ;;  %v5474_v25 = vld [vmem:[%s5454_s9 + $0x10] sm:$0xff]  ;;  %p5287_p2 = scmp.lt.s32.totalorder %s5985_s11, %s5285_s28  ;;  %p5288_p3 = scmp.lt.s32.totalorder %s5286_s29, %s5280_s23 }
  0x29   : > { %4807 = vmatprep.subr.mxu0 %v292_v15  ;;  %4822 = vmatpush3.msra.mxu1 %v296_v14  ;;  %v5457_v20 = vld [vmem:[%s5454_s9 + $0x20] sm:$0xff]  ;;  %v301_v26 = vld [vmem:[%s6030_s1 + $0x58] sm:$0xff]  ;;  %v300_v29 = vld [vmem:[%s6030_s1 + $0x50] sm:$0xff]  ;;  %p5283_p1 = pneg %p5282_p0 }
  0x2a   : > { %4808 = vmatpush3.msra.mxu0 %v292_v15  ;;  %4823 = vmatprep.subr.mxu1 %v295_v16  ;;  %v5460_v21 = vld [vmem:[%s5454_s9] sm:$0xff]  ;;  %v5488_v27 = vld [vmem:[%s5454_s9 + $0x38] sm:$0xff]  ;;  %v299_v30 = vld [vmem:[%s6030_s1 + $0x48] sm:$0xff]  ;;  %p5289_p4 = por %p5288_p3, %p5287_p2 }
  0x2b   : > { %4809 = vmatprep.subr.mxu0 %v291_v17  ;;  %4824 = vmatpush3.msra.mxu1 %v295_v16  ;;  %v5493_v28 = vld [vmem:[%s5454_s9 + $0x18] sm:$0xff]  ;;  %v298_v31 = vld [vmem:[%s6030_s1 + $0x40] sm:$0xff]  ;;  %v5515_v34 = vld [vmem:[%s5454_s9 + $0x48] sm:$0xff] }
  0x2c   : > { %4810 = vmatpush3.msra.mxu0 %v291_v17  ;;  %4825 = vmatprep.subr.mxu1 %v294_v18  ;;  %v5510_v33 = vld [vmem:[%s5454_s9 + $0x40] sm:$0xff]  ;;  %v5523_v35 = vld [vmem:[%s5454_s9 + $0x50] sm:$0xff]  ;;  %v5528_v36 = vld [vmem:[%s5454_s9 + $0x58] sm:$0xff]  ;;  %p5290_p5 = pnand %p5289_p4, %p5283_p1 }
  0x2d   : > { %4811 = vmatprep.subr.mxu0 %v290_v19  ;;  %4826 = vmatpush3.msra.mxu1 %v294_v18 }
  0x2e   : > { %4827 = vmatprep.mubr.msk.f32.mxu1 %vm302_vm0, %v5457_v20  ;;  %4812 = vmatpush3.msra.mxu0 %v290_v19 }
  0x2f   : > { %4813 = vmatprep.mubr.msk.f32.mxu0 %vm302_vm0, %v5460_v21  ;;  %4828 = vmatmul.mubr.msk.f32.vlgmr.msra.gmra.mxu1 %vm302_vm0, %v5463_v22 }
  0x30   : > { %4814 = vmatmul.mubr.msk.f32.vlgmr.msra.gmra.mxu0 %vm302_vm0, %v5466_v23  ;;  %4830 = vmatprep.mubr.msk.f32.mxu1 %vm302_vm0, %v5471_v24 }
  0x31   : > { %4816 = vmatprep.mubr.msk.f32.mxu0 %vm302_vm0, %v5474_v25  ;;  %4833 = vmatprep.subr.mxu0 %v301_v26 }
  0x32   : > { %4834 = vmatpush3.msra.mxu0 %v301_v26  ;;  %4847 = vmatprep.subr.mxu1 %v5342_v32 }
  0x33   : > { %4831 = vmatmul.mubr.msk.f32.gmra.mxu1 %vm302_vm0, %v5488_v27  ;;  %4835 = vmatprep.subr.mxu0 %v300_v29 }
  0x34   : > { %4817 = vmatmul.mubr.msk.f32.gmra.mxu0 %vm302_vm0, %v5493_v28  ;;  %4849 = vmatprep.mubr.msk.f32.mxu1 %vm5343_vm1, %v5342_v32 }
  0x35   : > { %4836 = vmatpush3.msra.mxu0 %v300_v29  ;;  %4841 = vmatprep.mubr.msk.f32.mxu0 %vm302_vm0, %v5510_v33 }
  0x36   : > { %4837 = vmatprep.subr.mxu0 %v299_v30 }
  0x37   : > { %4838 = vmatpush3.msra.mxu0 %v299_v30 }
  0x38   : > { %4839 = vmatprep.subr.mxu0 %v298_v31 }
  0x39   : > { %4840 = vmatpush3.msra.mxu0 %v298_v31  ;;  %v4497_v31 = vld [vmem:[%s6030_s1 + $0x98] sm:$0xff] }
  0x3a   : > { %4842 = vmatmul.mubr.msk.f32.vlgmr.msra.gmra.mxu0 %vm302_vm0, %v5515_v34  ;;  %4857 = vmatprep.subr.mxu0 %v5342_v32 }
  0x3b   : > { %4844 = vmatprep.mubr.msk.f32.mxu0 %vm302_vm0, %v5523_v35 }
  0x3e   : > { %4845 = vmatmul.mubr.msk.f32.gmra.mxu0 %vm302_vm0, %v5528_v36 }
  0x3f   : > { %4859 = vmatprep.mubr.msk.f32.mxu0 %vm5343_vm1, %v5342_v32 }
  0xef   : > { %v4829_v37 = vpop.f32.mrf.mxu1 }
  0xf0   : > { %v4815_v38 = vpop.f32.mrf.mxu0 }
  0xf1   : > { %v478_v39 = vpop.f32.mrf.mxu1 }
  0xf2   : > { %v381_v40 = vpop.f32.mrf.mxu0  ;;  %4848 = vmatpush3.xpose.msk.msra.mxu1 %vm594_vm2, %v478_v39 }
  0xf3   : > { %v4832_v41 = vpop.f32.mrf.mxu1  ;;  %4852 = vmatprep.subr.mxu1 %v5342_v32 }
  0xf4   : > { %v4818_v42 = vpop.f32.mrf.mxu0 }
  0xf5   : > { %4850 = vmatmul.mubr.msk.f32.vlgmr.msra.gmra.mxu1 %vm594_vm2, %v381_v40  ;;  %v488_v43 = vpop.f32.mrf.mxu1 }
  0xf6   : > { %4853 = vmatpush3.xpose.msk.msra.mxu1 %vm594_vm2, %v4829_v37  ;;  %4854 = vmatprep.mubr.msk.f32.mxu1 %vm5343_vm1, %v5342_v32  ;;  %v391_v44 = vpop.f32.mrf.mxu0 }
  0xf7   : > { %4858 = vmatpush3.xpose.msk.msra.mxu0 %vm594_vm2, %v488_v43  ;;  %4862 = vmatprep.subr.mxu1 %v5342_v32 }
  0xf8   : > { %4867 = vmatprep.subr.mxu0 %v5342_v32 }
  0xf9   : > { %4855 = vmatmul.mubr.msk.f32.vlgmr.msra.gmra.mxu1 %vm594_vm2, %v4815_v38 }
  0xfa   : > { %4863 = vmatpush3.xpose.msk.msra.mxu1 %vm594_vm2, %v4832_v41  ;;  %4860 = vmatmul.mubr.msk.f32.vlgmr.msra.gmra.mxu0 %vm594_vm2, %v391_v44  ;;  %v4843_v45 = vpop.f32.mrf.mxu0  ;;  %v4496_v41 = vld [vmem:[%s6030_s1 + $0x90] sm:$0xff]  ;;  %v4495_v44 = vld [vmem:[%s6030_s1 + $0x88] sm:$0xff] }
  0xfb   : > { %4864 = vmatprep.mubr.msk.f32.mxu1 %vm5343_vm1, %v5342_v32  ;;  %4872 = vmatprep.subr.mxu1 %v5342_v32 }
  0xfc   : > { %4869 = vmatprep.mubr.msk.f32.mxu0 %vm5343_vm1, %v5342_v32  ;;  %v575_v46 = vpop.f32.mrf.mxu0 }
  0xfd   : > { %4865 = vmatmul.mubr.msk.f32.vlgmr.msra.gmra.mxu1 %vm594_vm2, %v4818_v42  ;;  %4868 = vmatpush3.msra.mxu0 %v575_v46  ;;  %v4493_v42 = vld [vmem:[%s6030_s1 + $0x78] sm:$0xff]  ;;  %v4492_v46 = vld [vmem:[%s6030_s1 + $0x70] sm:$0xff] }
  0xfe   : > { %4874 = vmatprep.mubr.msk.f32.mxu1 %vm5343_vm1, %v5342_v32  ;;  %4873 = vmatpush3.msra.mxu1 %v4843_v45  ;;  %v4846_v47 = vpop.f32.mrf.mxu0 }
  0xff   : > { %4882 = vmatprep.subr.mxu1 %v5342_v32  ;;  %4877 = vmatprep.subr.mxu0 %v5342_v32 }
 0x100   : > { %v5556_v49 = vpop.f32.mrf.mxu0 }
 0x1b5   : > { %v667_v48 = vpop.f32.mrf.mxu1 }
 0x1b6   : > { %v899_v57 = vsel %vm594_vm2, %v667_v48, -inf }
 0x1b7   : > { %v4851_v50 = vpop.f32.mrf.mxu1 }
 0x1b8   : > { %v4501_v50 = vld [vmem:[%s6030_s1 + $0xb8] sm:$0xff] }
 0x1b9   : > { %v743_v51 = vpop.f32.mrf.mxu1 }
 0x1ba   : > { %v902_v52 = vsel %vm594_vm2, %v743_v51, -inf  ;;  %v819_v53 = vpop.f32.mrf.mxu0 }
 0x1bb   : > { %903 = vmax.xlane.f32.xlu0 %v902_v52  ;;  %v4856_v54 = vpop.f32.mrf.mxu1  ;;  %v905_v60 = vsel %vm594_vm2, %v819_v53, -inf  ;;  %v4499_v52 = vld [vmem:[%s6030_s1 + $0xa8] sm:$0xff] }
 0x1bc   : > { %v4861_v55 = vpop.f32.mrf.mxu0 }
 0x1bd   : > { %v895_v56 = vpop.f32.mrf.mxu1 }
 0x1be   : > { %v908_v58 = vsel %vm594_vm2, %v895_v56, -inf }
 0x1bf   : > { %900 = vmax.xlane.f32.xlu0 %v899_v57  ;;  %909 = vmax.xlane.f32.xlu1 %v908_v58  ;;  %v4866_v59 = vpop.f32.mrf.mxu1 }
 0x1c3   : > { %906 = vmax.xlane.f32.xlu1 %v905_v60 }
 0x244   : > { %v904_v61 = vpop.xlane.xlu0 %903 }
 0x245   : > { %v912_v62 = vsub.f32 %v743_v51, %v904_v61  ;;  %v4500_v51 = vld [vmem:[%s6030_s1 + $0xb0] sm:$0xff] }
 0x247   : > { %v917_v63 = vmul.f32 1.442695, %v912_v62 }
 0x248   : > { %v901_v0 = vpop.xlane.xlu0 %900  ;;  %v910_v1 = vpop.xlane.xlu1 %909 }
 0x249   : > { %5210 = vpow2.f32 %v917_v63  ;;  %v911_v2 = vsub.f32 %v667_v48, %v901_v0  ;;  %v914_v3 = vsub.f32 %v895_v56, %v910_v1  ;;  %v4491_v48 = vld [vmem:[%s6030_s1 + $0x68] sm:$0xff] }
 0x24b   : > { %v915_v4 = vmul.f32 1.442695, %v911_v2  ;;  %v921_v5 = vmul.f32 1.442695, %v914_v3 }
 0x24c   : > { %v907_v6 = vpop.xlane.xlu1 %906 }
 0x24d   : > { %5212 = vpow2.f32 %v915_v4  ;;  %v913_v7 = vsub.f32 %v819_v53, %v907_v6  ;;  %v4498_v53 = vld [vmem:[%s6030_s1 + $0xa0] sm:$0xff] }
 0x24e   : > { %5214 = vpow2.f32 %v921_v5 }
 0x24f   : > { %v919_v8 = vmul.f32 1.442695, %v913_v7 }
 0x251   : > { %5216 = vpow2.f32 %v919_v8 }
 0x256   : > { %v5211_v9 = vpop.eup %5210 }
 0x257   : > { %v926_v10 = vsel %vm594_vm2, %v5211_v9, 0.0 }
 0x258   : > { %927 = vadd.xlane.f32.xlu0 %v926_v10 }
 0x25a   : > { %v5213_v11 = vpop.eup %5212 }
 0x25b   : > { %v5215_v12 = vpop.eup %5214  ;;  %v923_v13 = vsel %vm594_vm2, %v5213_v11, 0.0 }
 0x25c   : > { %v932_v14 = vsel %vm594_vm2, %v5215_v12, 0.0  ;;  %924 = vadd.xlane.f32.xlu1 %v923_v13 }
 0x25d   : > { %933 = vadd.xlane.f32.xlu0 %v932_v14 }
 0x25e   : > { %v5217_v15 = vpop.eup %5216 }
 0x25f   : > { %v929_v16 = vsel %vm594_vm2, %v5217_v15, 0.0 }
 0x260   : > { %930 = vadd.xlane.f32.xlu1 %v929_v16 }
 0x2e1   : > { %v928_v17 = vpop.xlane.xlu0 %927 }
 0x2e2   : > { %5218 = vrcp.f32 %v928_v17 }
 0x2e5   : > { %v925_v18 = vpop.xlane.xlu1 %924 }
 0x2e6   : > { %v934_v19 = vpop.xlane.xlu0 %933  ;;  %5220 = vrcp.f32 %v925_v18 }
 0x2e7   : > { %5222 = vrcp.f32 %v934_v19 }
 0x2e9   : > { %v931_v26 = vpop.xlane.xlu1 %930 }
 0x2ea   : > { %5224 = vrcp.f32 %v931_v26 }
 0x2ef   : > { %v5219_v29 = vpop.eup %5218 }
 0x2f0   : > { %v940_v30 = vmul.f32 %v5219_v29, %v5211_v9 }
 0x2f2   : > { %4875 = vmatmul.mubr.msk.f32.vlgmr.msra.gmra.mxu1 %vm594_vm2, %v940_v30 }
 0x2f3   : > { %v5221_v37 = vpop.eup %5220  ;;  %4883 = vmatpush3.msra.mxu1 %v4846_v47  ;;  %4884 = vmatprep.mubr.msk.f32.mxu1 %vm5343_vm1, %v5342_v32  ;;  %v4494_v47 = vld [vmem:[%s6030_s1 + $0x80] sm:$0xff] }
 0x2f4   : > { %v5223_v38 = vpop.eup %5222  ;;  %4901 = vmatprep.subr.mxu1 %v4497_v31  ;;  %v939_v39 = vmul.f32 %v5221_v37, %v5213_v11 }
 0x2f5   : > { %v942_v40 = vmul.f32 %v5223_v38, %v5215_v12 }
 0x2f6   : > { %4870 = vmatmul.mubr.msk.f32.vlgmr.msra.gmra.mxu0 %vm594_vm2, %v939_v39 }
 0x2f7   : > { %v5225_v43 = vpop.eup %5224  ;;  %4878 = vmatpush3.msra.mxu0 %v5556_v49  ;;  %4885 = vmatmul.mubr.msk.f32.vlgmr.msra.gmra.mxu1 %vm594_vm2, %v942_v40  ;;  %v4490_v49 = vld [vmem:[%s6030_s1 + $0x60] sm:$0xff] }
 0x2f8   : > { %4902 = vmatpush3.msra.mxu1 %v4497_v31  ;;  %4879 = vmatprep.mubr.msk.f32.mxu0 %vm5343_vm1, %v5342_v32  ;;  %v941_v45 = vmul.f32 %v5225_v43, %v5217_v15 }
 0x2f9   : > { %4903 = vmatprep.subr.mxu1 %v4496_v41  ;;  %4887 = vmatprep.subr.mxu0 %v4493_v42 }
 0x2fa   : > { %4904 = vmatpush3.msra.mxu1 %v4496_v41  ;;  %4880 = vmatmul.mubr.msk.f32.vlgmr.msra.gmra.mxu0 %vm594_vm2, %v941_v45 }
 0x2fb   : > { %4905 = vmatprep.subr.mxu1 %v4495_v44  ;;  %4888 = vmatpush3.msra.mxu0 %v4493_v42 }
 0x2fc   : > { %4906 = vmatpush3.msra.mxu1 %v4495_v44  ;;  %4889 = vmatprep.subr.mxu0 %v4492_v46 }
 0x2fd   : > { %4907 = vmatprep.subr.mxu1 %v4494_v47  ;;  %4890 = vmatpush3.msra.mxu0 %v4492_v46 }
 0x2fe   : > { %4908 = vmatpush3.msra.mxu1 %v4494_v47  ;;  %4909 = vmatprep.mubr.msk.f32.mxu1 %vm302_vm0, %v5457_v20 }
 0x2ff   : > { %4891 = vmatprep.subr.mxu0 %v4491_v48  ;;  %4910 = vmatmul.mubr.msk.f32.vlgmr.msra.gmra.mxu1 %vm302_vm0, %v5463_v22 }
 0x300   : > { %4892 = vmatpush3.msra.mxu0 %v4491_v48  ;;  %4895 = vmatprep.mubr.msk.f32.mxu0 %vm302_vm0, %v5460_v21 }
 0x301   : > { %4893 = vmatprep.subr.mxu0 %v4490_v49  ;;  %4912 = vmatprep.mubr.msk.f32.mxu1 %vm302_vm0, %v5471_v24 }
 0x302   : > { %4894 = vmatpush3.msra.mxu0 %v4490_v49  ;;  %4929 = vmatprep.subr.mxu1 %v5342_v32 }
 0x303   : > { %4896 = vmatmul.mubr.msk.f32.vlgmr.msra.gmra.mxu0 %vm302_vm0, %v5466_v23  ;;  %4913 = vmatmul.mubr.msk.f32.gmra.mxu1 %vm302_vm0, %v5488_v27 }
 0x304   : > { %4898 = vmatprep.mubr.msk.f32.mxu0 %vm302_vm0, %v5474_v25  ;;  %4931 = vmatprep.mubr.msk.f32.mxu1 %vm5343_vm1, %v5342_v32 }
 0x305   : > { %4915 = vmatprep.subr.mxu0 %v4501_v50 }
 0x306   : > { %4916 = vmatpush3.msra.mxu0 %v4501_v50 }
 0x307   : > { %4899 = vmatmul.mubr.msk.f32.gmra.mxu0 %vm302_vm0, %v5493_v28  ;;  %4917 = vmatprep.subr.mxu0 %v4500_v51 }
 0x308   : > { %4923 = vmatprep.mubr.msk.f32.mxu0 %vm302_vm0, %v5510_v33  ;;  %4918 = vmatpush3.msra.mxu0 %v4500_v51 }
 0x309   : > { %4919 = vmatprep.subr.mxu0 %v4499_v52 }
 0x30a   : > { %4920 = vmatpush3.msra.mxu0 %v4499_v52 }
 0x30b   : > { %4921 = vmatprep.subr.mxu0 %v4498_v53 }
 0x30c   : > { %4922 = vmatpush3.msra.mxu0 %v4498_v53 }
 0x30d   : > { %4924 = vmatmul.mubr.msk.f32.vlgmr.msra.gmra.mxu0 %vm302_vm0, %v5515_v34  ;;  %4939 = vmatprep.subr.mxu0 %v5342_v32 }
 0x30e   : > { %4926 = vmatprep.mubr.msk.f32.mxu0 %vm302_vm0, %v5523_v35 }
 0x311   : > { %4927 = vmatmul.mubr.msk.f32.gmra.mxu0 %vm302_vm0, %v5528_v36 }
 0x312   : > { %4941 = vmatprep.mubr.msk.f32.mxu0 %vm5343_vm1, %v5342_v32 }
 0x3b2   : > { %v5641_v54 = vpop.f32.mrf.mxu1 }
 0x3b4   : > { %v4876_v55 = vpop.f32.mrf.mxu1 }
 0x3b6   : > { %v5643_v56 = vpop.f32.mrf.mxu0 }
 0x3b7   : > { %v5645_v57 = vpop.f32.mrf.mxu1 }
 0x3b8   : > { %v4871_v58 = vpop.f32.mrf.mxu0 }
 0x3b9   : > { %v4886_v59 = vpop.f32.mrf.mxu1 }
 0x3ba   : > { %v5647_v60 = vpop.f32.mrf.mxu0 }
 0x3bc   : > { %v4881_v61 = vpop.f32.mrf.mxu0 }
 0x3bf   : > { %v4911_v62 = vpop.f32.mrf.mxu1 }
 0x3c1   : > { %v1400_v63 = vpop.f32.mrf.mxu1 }
 0x3c2   : > { %4930 = vmatpush3.xpose.msk.msra.mxu1 %vm594_vm2, %v1400_v63 }
 0x3c3   : > { %v4897_v0 = vpop.f32.mrf.mxu0  ;;  %v4914_v1 = vpop.f32.mrf.mxu1  ;;  %4934 = vmatprep.subr.mxu1 %v5342_v32 }
 0x3c5   : > { %v1315_v2 = vpop.f32.mrf.mxu0  ;;  %v1410_v3 = vpop.f32.mrf.mxu1 }
 0x3c6   : > { %4932 = vmatmul.mubr.msk.f32.vlgmr.msra.gmra.mxu1 %vm594_vm2, %v1315_v2  ;;  %4940 = vmatpush3.xpose.msk.msra.mxu0 %vm594_vm2, %v1410_v3 }
 0x3c7   : > { %4935 = vmatpush3.xpose.msk.msra.mxu1 %vm594_vm2, %v4911_v62  ;;  %v4900_v4 = vpop.f32.mrf.mxu0  ;;  %4936 = vmatprep.mubr.msk.f32.mxu1 %vm5343_vm1, %v5342_v32 }
 0x3c8   : > { %4944 = vmatprep.subr.mxu1 %v5342_v32  ;;  %4949 = vmatprep.subr.mxu0 %v5342_v32 }
 0x3c9   : > { %v1325_v5 = vpop.f32.mrf.mxu0 }
 0x3ca   : > { %4937 = vmatmul.mubr.msk.f32.vlgmr.msra.gmra.mxu1 %vm594_vm2, %v4897_v0  ;;  %4942 = vmatmul.mubr.msk.f32.vlgmr.msra.gmra.mxu0 %vm594_vm2, %v1325_v5  ;;  %v1235_v5 = vld [vmem:[%s6031_s2] sm:$0xff] }
 0x3cb   : > { %4945 = vmatpush3.xpose.msk.msra.mxu1 %vm594_vm2, %v4914_v1  ;;  %4946 = vmatprep.mubr.msk.f32.mxu1 %vm5343_vm1, %v5342_v32 }
 0x3cc   : > { %4954 = vmatprep.subr.mxu1 %v5342_v32  ;;  %4951 = vmatprep.mubr.msk.f32.mxu0 %vm5343_vm1, %v5342_v32 }
 0x3cd   : > { %v4925_v6 = vpop.f32.mrf.mxu0 }
 0x3ce   : > { %4947 = vmatmul.mubr.msk.f32.vlgmr.msra.gmra.mxu1 %vm594_vm2, %v4900_v4 }
 0x3cf   : > { %4956 = vmatprep.mubr.msk.f32.mxu1 %vm5343_vm1, %v5342_v32  ;;  %4955 = vmatpush3.msra.mxu1 %v4925_v6  ;;  %v1485_v7 = vpop.f32.mrf.mxu0 }
 0x3d0   : > { %4964 = vmatprep.subr.mxu1 %v5342_v32  ;;  %4950 = vmatpush3.msra.mxu0 %v1485_v7 }
 0x3d1   : > { %4959 = vmatprep.subr.mxu0 %v5342_v32  ;;  %v5671_v8 = vpop.f32.mrf.mxu0 }
 0x3d3   : > { %v1495_v10 = vpop.f32.mrf.mxu0 }
 0x486   : > { %v1576_v9 = vpop.f32.mrf.mxu1 }
 0x487   : > { %v1808_v11 = vsel %vm594_vm2, %v1576_v9, -inf }
 0x488   : > { %1809 = vmax.xlane.f32.xlu0 %v1808_v11  ;;  %v4933_v12 = vpop.f32.mrf.mxu1 }
 0x48a   : > { %v1652_v13 = vpop.f32.mrf.mxu1  ;;  %v1728_v14 = vpop.f32.mrf.mxu0 }
 0x48b   : > { %v1811_v15 = vsel %vm594_vm2, %v1652_v13, -inf  ;;  %v1814_v16 = vsel %vm594_vm2, %v1728_v14, -inf }
 0x48c   : > { %1812 = vmax.xlane.f32.xlu1 %v1811_v15  ;;  %v4938_v17 = vpop.f32.mrf.mxu1  ;;  %1815 = vmax.xlane.f32.xlu0 %v1814_v16  ;;  %v4943_v18 = vpop.f32.mrf.mxu0  ;;  %v4535_v15 = vld [vmem:[%s6030_s1 + $0xc0] sm:$0xff] }
 0x48d   : > { %v4546_v17 = vld [vmem:[%s6030_s1 + $0x118] sm:$0xff] }
 0x48e   : > { %v1804_v19 = vpop.f32.mrf.mxu1 }
 0x48f   : > { %v1817_v26 = vsel %vm594_vm2, %v1804_v19, -inf }
 0x490   : > { %1818 = vmax.xlane.f32.xlu1 %v1817_v26  ;;  %v4948_v29 = vpop.f32.mrf.mxu1 }
 0x491   : > { %v4545_v29 = vld [vmem:[%s6030_s1 + $0x110] sm:$0xff] }
 0x511   : > { %v1810_v30 = vpop.xlane.xlu0 %1809 }
 0x512   : > { %v1820_v31 = vsub.f32 %v1576_v9, %v1810_v30 }
 0x514   : > { %v1824_v37 = vmul.f32 1.442695, %v1820_v31  ;;  %v4544_v31 = vld [vmem:[%s6030_s1 + $0x108] sm:$0xff] }
 0x515   : > { %v1813_v38 = vpop.xlane.xlu1 %1812  ;;  %v1816_v39 = vpop.xlane.xlu0 %1815 }
 0x516   : > { %5226 = vpow2.f32 %v1824_v37  ;;  %v1821_v40 = vsub.f32 %v1652_v13, %v1813_v38  ;;  %v1822_v41 = vsub.f32 %v1728_v14, %v1816_v39  ;;  %v4543_v38 = vld [vmem:[%s6030_s1 + $0x100] sm:$0xff] }
 0x518   : > { %v1826_v42 = vmul.f32 1.442695, %v1821_v40  ;;  %v1828_v43 = vmul.f32 1.442695, %v1822_v41 }
 0x519   : > { %v1819_v44 = vpop.xlane.xlu1 %1818 }
 0x51a   : > { %5228 = vpow2.f32 %v1826_v42  ;;  %v1823_v45 = vsub.f32 %v1804_v19, %v1819_v44 }
 0x51b   : > { %5230 = vpow2.f32 %v1828_v43 }
 0x51c   : > { %v1830_v46 = vmul.f32 1.442695, %v1823_v45 }
 0x51e   : > { %5232 = vpow2.f32 %v1830_v46 }
 0x523   : > { %v5227_v47 = vpop.eup %5226 }
 0x524   : > { %v1832_v48 = vsel %vm594_vm2, %v5227_v47, 0.0 }
 0x525   : > { %1833 = vadd.xlane.f32.xlu0 %v1832_v48 }
 0x527   : > { %v5229_v49 = vpop.eup %5228 }
 0x528   : > { %v5231_v50 = vpop.eup %5230  ;;  %v1835_v51 = vsel %vm594_vm2, %v5229_v49, 0.0 }
 0x529   : > { %1836 = vadd.xlane.f32.xlu1 %v1835_v51  ;;  %v1838_v52 = vsel %vm594_vm2, %v5231_v50, 0.0 }
 0x52a   : > { %1839 = vadd.xlane.f32.xlu0 %v1838_v52 }
 0x52b   : > { %v5233_v53 = vpop.eup %5232 }
 0x52c   : > { %v1841_v55 = vsel %vm594_vm2, %v5233_v53, 0.0 }
 0x52d   : > { %1842 = vadd.xlane.f32.xlu1 %v1841_v55 }
 0x5ae   : > { %v1834_v58 = vpop.xlane.xlu0 %1833 }
 0x5af   : > { %5234 = vrcp.f32 %v1834_v58 }
 0x5b2   : > { %v1837_v59 = vpop.xlane.xlu1 %1836 }
 0x5b3   : > { %5236 = vrcp.f32 %v1837_v59  ;;  %v1840_v61 = vpop.xlane.xlu0 %1839 }
 0x5b4   : > { %5238 = vrcp.f32 %v1840_v61 }
 0x5b6   : > { %v1843_v62 = vpop.xlane.xlu1 %1842 }
 0x5b7   : > { %5240 = vrcp.f32 %v1843_v62 }
 0x5bc   : > { %v5235_v63 = vpop.eup %5234 }
 0x5bd   : > { %v1848_v0 = vmul.f32 %v5235_v63, %v5227_v47 }
 0x5bf   : > { %4952 = vmatmul.mubr.msk.f32.vlgmr.msra.gmra.mxu0 %vm594_vm2, %v1848_v0 }
 0x5c0   : > { %v5237_v1 = vpop.eup %5236  ;;  %4960 = vmatpush3.msra.mxu0 %v1495_v10  ;;  %4961 = vmatprep.mubr.msk.f32.mxu0 %vm5343_vm1, %v5342_v32 }
 0x5c1   : > { %v5239_v2 = vpop.eup %5238  ;;  %v1849_v3 = vmul.f32 %v5237_v1, %v5229_v49 }
 0x5c2   : > { %v1850_v4 = vmul.f32 %v5239_v2, %v5231_v50 }
 0x5c3   : > { %4957 = vmatmul.mubr.msk.f32.vlgmr.msra.gmra.mxu1 %vm594_vm2, %v1849_v3 }
 0x5c4   : > { %v5241_v6 = vpop.eup %5240  ;;  %4962 = vmatmul.mubr.msk.f32.vlgmr.msra.gmra.mxu0 %vm594_vm2, %v1850_v4  ;;  %4965 = vmatpush3.msra.mxu1 %v5671_v8  ;;  %v4542_v8 = vld [vmem:[%s6030_s1 + $0xf8] sm:$0xff] }
 0x5c5   : > { %4966 = vmatprep.mubr.msk.f32.mxu1 %vm5343_vm1, %v5342_v32  ;;  %v1851_v7 = vmul.f32 %v5241_v6, %v5233_v53  ;;  %4977 = vmatprep.subr.mxu1 %v1235_v5 }
 0x5c7   : > { %4967 = vmatmul.mubr.msk.f32.vlgmr.msra.gmra.mxu1 %vm594_vm2, %v1851_v7 }
 0x5c8   : > { %4979 = vmatprep.mubr.msk.f32.mxu1 %vm594_vm2, %v5643_v56  ;;  %4978 = vmatpush3.msra.mxu1 %v1235_v5  ;;  %v4541_v56 = vld [vmem:[%s6030_s1 + $0xf0] sm:$0xff] }
 0x5c9   : > { %4999 = vmatprep.subr.mxu1 %v4542_v8 }
 0x5cb   : > { %4980 = vmatmul.mubr.msk.f32.vlgmr.msra.gmra.mxu1 %vm594_vm2, %v5641_v54  ;;  %v4526_v54 = vld [vmem:[%s6031_s2 + $0x8] sm:$0xff] }
 0x5cc   : > { %4982 = vmatprep.mubr.msk.f32.mxu1 %vm594_vm2, %v5647_v60  ;;  %5000 = vmatpush3.msra.mxu1 %v4542_v8  ;;  %v4539_v60 = vld [vmem:[%s6030_s1 + $0xe0] sm:$0xff] }
 0x5cd   : > { %5001 = vmatprep.subr.mxu1 %v4541_v56  ;;  %4969 = vmatprep.subr.mxu0 %v4526_v54 }
 0x5ce   : > { %5002 = vmatpush3.msra.mxu1 %v4541_v56  ;;  %4970 = vmatpush3.msra.mxu0 %v4526_v54 }
 0x5cf   : > { %4983 = vmatmul.mubr.msk.f32.gmra.mxu1 %vm594_vm2, %v5645_v57  ;;  %v4538_v57 = vld [vmem:[%s6030_s1 + $0xd8] sm:$0xff] }
 0x5d0   : > { %5007 = vmatprep.mubr.msk.f32.mxu1 %vm302_vm0, %v5457_v20  ;;  %v4540_v20 = vld [vmem:[%s6030_s1 + $0xe8] sm:$0xff]  ;;  %4985 = vmatprep.subr.mxu0 %v4538_v57 }
 0x5d1   : > { %5003 = vmatprep.subr.mxu1 %v4540_v20 }
 0x5d2   : > { %5004 = vmatpush3.msra.mxu1 %v4540_v20 }
 0x5d3   : > { %5005 = vmatprep.subr.mxu1 %v4539_v60 }
 0x5d4   : > { %5006 = vmatpush3.msra.mxu1 %v4539_v60 }
 0x5d5   : > { %5008 = vmatmul.mubr.msk.f32.vlgmr.msra.gmra.mxu1 %vm302_vm0, %v5463_v22  ;;  %5027 = vmatprep.subr.mxu1 %v5342_v32  ;;  %v4537_v22 = vld [vmem:[%s6030_s1 + $0xd0] sm:$0xff] }
 0x5d6   : > { %5010 = vmatprep.mubr.msk.f32.mxu1 %vm302_vm0, %v5471_v24  ;;  %v4536_v24 = vld [vmem:[%s6030_s1 + $0xc8] sm:$0xff] }
 0x5d9   : > { %5011 = vmatmul.mubr.msk.f32.gmra.mxu1 %vm302_vm0, %v5488_v27 }
 0x5da   : > { %5029 = vmatprep.mubr.msk.f32.mxu1 %vm5343_vm1, %v5342_v32 }
 0x67f   : > { %v1921_v9 = vpop.f32.mrf.mxu0 }
 0x680   : > { %4971 = vmatprep.mubr.msk.f32.mxu0 %vm594_vm2, %v1921_v9 }
 0x681   : > { %v4953_v10 = vpop.f32.mrf.mxu0 }
 0x683   : > { %v1994_v11 = vpop.f32.mrf.mxu1 }
 0x684   : > { %v2067_v12 = vpop.f32.mrf.mxu0  ;;  %4972 = vmatmul.mubr.msk.f32.vlgmr.msra.gmra.mxu0 %vm594_vm2, %v1994_v11 }
 0x685   : > { %v4958_v13 = vpop.f32.mrf.mxu1  ;;  %4974 = vmatprep.mubr.msk.f32.mxu0 %vm594_vm2, %v2067_v12  ;;  %4986 = vmatpush3.msra.mxu0 %v4538_v57 }
 0x686   : > { %v4963_v27 = vpop.f32.mrf.mxu0  ;;  %4987 = vmatprep.subr.mxu0 %v4537_v22 }
 0x687   : > { %v2140_v14 = vpop.f32.mrf.mxu1  ;;  %4988 = vmatpush3.msra.mxu0 %v4537_v22 }
 0x688   : > { %4975 = vmatmul.mubr.msk.f32.gmra.mxu0 %vm594_vm2, %v2140_v14  ;;  %4989 = vmatprep.subr.mxu0 %v4536_v24 }
 0x689   : > { %v4968_v16 = vpop.f32.mrf.mxu1  ;;  %4990 = vmatpush3.msra.mxu0 %v4536_v24  ;;  %4993 = vmatprep.mubr.msk.f32.mxu0 %vm302_vm0, %v5460_v21 }
 0x68a   : > { %4991 = vmatprep.subr.mxu0 %v4535_v15 }
 0x68b   : > { %4992 = vmatpush3.msra.mxu0 %v4535_v15  ;;  %v5756_v18 = vpop.f32.mrf.mxu1 }
 0x68c   : > { %4994 = vmatmul.mubr.msk.f32.vlgmr.msra.gmra.mxu0 %vm302_vm0, %v5466_v23  ;;  %5013 = vmatprep.subr.mxu0 %v4546_v17 }
 0x68d   : > { %4996 = vmatprep.mubr.msk.f32.mxu0 %vm302_vm0, %v5474_v25  ;;  %5014 = vmatpush3.msra.mxu0 %v4546_v17  ;;  %v5758_v19 = vpop.f32.mrf.mxu1 }
 0x68e   : > { %5015 = vmatprep.subr.mxu0 %v4545_v29 }
 0x68f   : > { %v5760_v26 = vpop.f32.mrf.mxu1  ;;  %5016 = vmatpush3.msra.mxu0 %v4545_v29 }
 0x690   : > { %4997 = vmatmul.mubr.msk.f32.gmra.mxu0 %vm302_vm0, %v5493_v28  ;;  %5017 = vmatprep.subr.mxu0 %v4544_v31 }
 0x691   : > { %5021 = vmatprep.mubr.msk.f32.mxu0 %vm302_vm0, %v5510_v33  ;;  %v5765_v30 = vpop.f32.mrf.mxu1  ;;  %5018 = vmatpush3.msra.mxu0 %v4544_v31 }
 0x692   : > { %5019 = vmatprep.subr.mxu0 %v4543_v38 }
 0x693   : > { %5020 = vmatpush3.msra.mxu0 %v4543_v38 }
 0x694   : > { %5022 = vmatmul.mubr.msk.f32.vlgmr.msra.gmra.mxu0 %vm302_vm0, %v5515_v34  ;;  %5037 = vmatprep.subr.mxu0 %v5342_v32 }
 0x695   : > { %v5009_v37 = vpop.f32.mrf.mxu1  ;;  %5024 = vmatprep.mubr.msk.f32.mxu0 %vm302_vm0, %v5523_v35 }
 0x697   : > { %v2504_v39 = vpop.f32.mrf.mxu1 }
 0x698   : > { %5028 = vmatpush3.xpose.msk.msra.mxu1 %vm594_vm2, %v2504_v39  ;;  %5025 = vmatmul.mubr.msk.f32.gmra.mxu0 %vm302_vm0, %v5528_v36 }
 0x699   : > { %v5012_v40 = vpop.f32.mrf.mxu1  ;;  %5032 = vmatprep.subr.mxu1 %v5342_v32  ;;  %5039 = vmatprep.mubr.msk.f32.mxu0 %vm5343_vm1, %v5342_v32 }
 0x69b   : > { %v2514_v41 = vpop.f32.mrf.mxu1 }
 0x69c   : > { %5038 = vmatpush3.xpose.msk.msra.mxu0 %vm594_vm2, %v2514_v41 }
 0x69d   : > { %5047 = vmatprep.subr.mxu0 %v5342_v32 }
 0x744   : > { %v5786_v34 = vpop.f32.mrf.mxu0 }
 0x746   : > { %v5788_v42 = vpop.f32.mrf.mxu0 }
 0x748   : > { %v5790_v43 = vpop.f32.mrf.mxu0 }
 0x74a   : > { %v5792_v35 = vpop.f32.mrf.mxu0 }
 0x74c   : > { %v4995_v44 = vpop.f32.mrf.mxu0 }
 0x74e   : > { %v2419_v45 = vpop.f32.mrf.mxu0 }
 0x74f   : > { %5030 = vmatmul.mubr.msk.f32.vlgmr.msra.gmra.mxu1 %vm594_vm2, %v2419_v45 }
 0x750   : > { %5033 = vmatpush3.xpose.msk.msra.mxu1 %vm594_vm2, %v5009_v37  ;;  %v4998_v46 = vpop.f32.mrf.mxu0  ;;  %5034 = vmatprep.mubr.msk.f32.mxu1 %vm5343_vm1, %v5342_v32 }
 0x751   : > { %5042 = vmatprep.subr.mxu1 %v5342_v32 }
 0x752   : > { %v2429_v47 = vpop.f32.mrf.mxu0 }
 0x753   : > { %5035 = vmatmul.mubr.msk.f32.vlgmr.msra.gmra.mxu1 %vm594_vm2, %v4995_v44  ;;  %5040 = vmatmul.mubr.msk.f32.vlgmr.msra.gmra.mxu0 %vm594_vm2, %v2429_v47  ;;  %v4571_v47 = vld [vmem:[%s6031_s2 + $0x10] sm:$0xff] }
 0x754   : > { %5043 = vmatpush3.xpose.msk.msra.mxu1 %vm594_vm2, %v5012_v40  ;;  %5044 = vmatprep.mubr.msk.f32.mxu1 %vm5343_vm1, %v5342_v32  ;;  %v5023_v48 = vpop.f32.mrf.mxu0 }
 0x755   : > { %5052 = vmatprep.subr.mxu1 %v5342_v32  ;;  %5049 = vmatprep.mubr.msk.f32.mxu0 %vm5343_vm1, %v5342_v32 }
 0x756   : > { %v2589_v49 = vpop.f32.mrf.mxu0 }
 0x757   : > { %5045 = vmatmul.mubr.msk.f32.vlgmr.msra.gmra.mxu1 %vm594_vm2, %v4998_v46  ;;  %5048 = vmatpush3.msra.mxu0 %v2589_v49  ;;  %v4579_v49 = vld [vmem:[%s6030_s1 + $0x138] sm:$0xff] }
 0x758   : > { %5054 = vmatprep.mubr.msk.f32.mxu1 %vm5343_vm1, %v5342_v32  ;;  %5053 = vmatpush3.msra.mxu1 %v5023_v48  ;;  %v5812_v50 = vpop.f32.mrf.mxu0  ;;  %v4583_v48 = vld [vmem:[%s6030_s1 + $0x158] sm:$0xff] }
 0x759   : > { %5062 = vmatprep.subr.mxu1 %v5342_v32  ;;  %5057 = vmatprep.subr.mxu0 %v5342_v32 }
 0x75a   : > { %v2599_v52 = vpop.f32.mrf.mxu0 }
 0x80f   : > { %v2680_v51 = vpop.f32.mrf.mxu1 }
 0x810   : > { %v2912_v53 = vsel %vm594_vm2, %v2680_v51, -inf }
 0x811   : > { %2913 = vmax.xlane.f32.xlu0 %v2912_v53  ;;  %v5031_v55 = vpop.f32.mrf.mxu1 }
 0x813   : > { %v2756_v58 = vpop.f32.mrf.mxu1  ;;  %v2832_v59 = vpop.f32.mrf.mxu0 }
 0x814   : > { %v2915_v61 = vsel %vm594_vm2, %v2756_v58, -inf  ;;  %v2918_v62 = vsel %vm594_vm2, %v2832_v59, -inf }
 0x815   : > { %2916 = vmax.xlane.f32.xlu1 %v2915_v61  ;;  %v5036_v63 = vpop.f32.mrf.mxu1  ;;  %2919 = vmax.xlane.f32.xlu0 %v2918_v62  ;;  %v5041_v0 = vpop.f32.mrf.mxu0  ;;  %v4580_v61 = vld [vmem:[%s6030_s1 + $0x140] sm:$0xff] }
 0x816   : > { %v5274_v63 = vld [vmem:[%s5454_s9 + $0x20] sm:$0xff]  ;;  %v5275_v0 = vld [vmem:[%s5454_s9 + $0x28] sm:$0xff] }
 0x817   : > { %v2908_v1 = vpop.f32.mrf.mxu1 }
 0x818   : > { %v2921_v2 = vsel %vm594_vm2, %v2908_v1, -inf }
 0x819   : > { %2922 = vmax.xlane.f32.xlu1 %v2921_v2  ;;  %v5046_v3 = vpop.f32.mrf.mxu1  ;;  %v5277_v2 = vld [vmem:[%s5454_s9 + $0x38] sm:$0xff] }
 0x81a   : > { %v4587_v3 = vld [vmem:[%s6030_s1 + $0x178] sm:$0xff] }
 0x89a   : > { %v2914_v4 = vpop.xlane.xlu0 %2913 }
 0x89b   : > { %v2924_v5 = vsub.f32 %v2680_v51, %v2914_v4  ;;  %v4576_v51 = vld [vmem:[%s6030_s1 + $0x120] sm:$0xff]  ;;  %v4586_v4 = vld [vmem:[%s6030_s1 + $0x170] sm:$0xff] }
 0x89d   : > { %v2928_v6 = vmul.f32 1.442695, %v2924_v5  ;;  %v4585_v5 = vld [vmem:[%s6030_s1 + $0x168] sm:$0xff] }
 0x89e   : > { %v2917_v7 = vpop.xlane.xlu1 %2916  ;;  %v2920_v8 = vpop.xlane.xlu0 %2919 }
 0x89f   : > { %5242 = vpow2.f32 %v2928_v6  ;;  %v2925_v56 = vsub.f32 %v2756_v58, %v2917_v7  ;;  %v2926_v54 = vsub.f32 %v2832_v59, %v2920_v8  ;;  %v4582_v58 = vld [vmem:[%s6030_s1 + $0x150] sm:$0xff]  ;;  %v4584_v6 = vld [vmem:[%s6030_s1 + $0x160] sm:$0xff]  ;;  %v5278_v7 = vld [vmem:[%s5454_s9 + $0x48] sm:$0xff] }
 0x8a0   : > { %v5279_v8 = vld [vmem:[%s5454_s9 + $0x50] sm:$0xff] }
 0x8a1   : > { %v2930_v20 = vmul.f32 1.442695, %v2925_v56  ;;  %v2932_v57 = vmul.f32 1.442695, %v2926_v54  ;;  %v2327_v56 = vadd.f32 %v5756_v18, %v5786_v34 }
 0x8a2   : > { %v2923_v60 = vpop.xlane.xlu1 %2922 }
 0x8a3   : > { %5244 = vpow2.f32 %v2930_v20  ;;  %v2927_v9 = vsub.f32 %v2908_v1, %v2923_v60  ;;  %v5276_v1 = vld [vmem:[%s5454_s9 + $0x30] sm:$0xff]  ;;  %v2322_v20 = vadd.f32 %v5758_v19, %v5788_v42 }
 0x8a4   : > { %5246 = vpow2.f32 %v2932_v57 }
 0x8a5   : > { %v2934_v10 = vmul.f32 1.442695, %v2927_v9  ;;  %v2337_v9 = vadd.f32 %v5760_v26, %v5790_v43 }
 0x8a7   : > { %5248 = vpow2.f32 %v2934_v10 }
 0x8ac   : > { %v5243_v11 = vpop.eup %5242 }
 0x8ad   : > { %v2936_v22 = vsel %vm594_vm2, %v5243_v11, 0.0 }
 0x8ae   : > { %2937 = vadd.xlane.f32.xlu0 %v2936_v22 }
 0x8b0   : > { %v5245_v12 = vpop.eup %5244 }
 0x8b1   : > { %v5247_v13 = vpop.eup %5246  ;;  %v2939_v24 = vsel %vm594_vm2, %v5245_v12, 0.0 }
 0x8b2   : > { %2940 = vadd.xlane.f32.xlu1 %v2939_v24  ;;  %v2942_v27 = vsel %vm594_vm2, %v5247_v13, 0.0 }
 0x8b3   : > { %2943 = vadd.xlane.f32.xlu0 %v2942_v27 }
 0x8b4   : > { %v5249_v14 = vpop.eup %5248 }
 0x8b5   : > { %v2945_v15 = vsel %vm594_vm2, %v5249_v14, 0.0 }
 0x8b6   : > { %2946 = vadd.xlane.f32.xlu1 %v2945_v15 }
 0x937   : > { %v2938_v16 = vpop.xlane.xlu0 %2937 }
 0x938   : > { %5250 = vrcp.f32 %v2938_v16 }
 0x93b   : > { %v2941_v17 = vpop.xlane.xlu1 %2940 }
 0x93c   : > { %5252 = vrcp.f32 %v2941_v17  ;;  %v2944_v29 = vpop.xlane.xlu0 %2943 }
 0x93d   : > { %5254 = vrcp.f32 %v2944_v29 }
 0x93f   : > { %v2947_v31 = vpop.xlane.xlu1 %2946 }
 0x940   : > { %5256 = vrcp.f32 %v2947_v31 }
 0x945   : > { %v5251_v37 = vpop.eup %5250 }
 0x946   : > { %v2952_v38 = vmul.f32 %v5251_v37, %v5243_v11 }
 0x948   : > { %5050 = vmatmul.mubr.msk.f32.vlgmr.msra.gmra.mxu0 %vm594_vm2, %v2952_v38 }
 0x949   : > { %v5253_v39 = vpop.eup %5252  ;;  %5058 = vmatpush3.msra.mxu0 %v2599_v52  ;;  %5059 = vmatprep.mubr.msk.f32.mxu0 %vm5343_vm1, %v5342_v32 }
 0x94a   : > { %v5255_v40 = vpop.eup %5254  ;;  %v2953_v41 = vmul.f32 %v5253_v39, %v5245_v12  ;;  %5067 = vmatprep.subr.mxu0 %v4571_v47 }
 0x94b   : > { %v2954_v44 = vmul.f32 %v5255_v40, %v5247_v13 }
 0x94c   : > { %5055 = vmatmul.mubr.msk.f32.vlgmr.msra.gmra.mxu1 %vm594_vm2, %v2953_v41 }
 0x94d   : > { %v5257_v45 = vpop.eup %5256  ;;  %5060 = vmatmul.mubr.msk.f32.vlgmr.msra.gmra.mxu0 %vm594_vm2, %v2954_v44  ;;  %5063 = vmatpush3.msra.mxu1 %v5812_v50  ;;  %v4577_v50 = vld [vmem:[%s6030_s1 + $0x128] sm:$0xff] }
 0x94e   : > { %5064 = vmatprep.mubr.msk.f32.mxu1 %vm5343_vm1, %v5342_v32  ;;  %v2955_v46 = vmul.f32 %v5257_v45, %v5249_v14  ;;  %5068 = vmatpush3.msra.mxu0 %v4571_v47 }
 0x94f   : > { %5089 = vmatprep.subr.mxu0 %v4583_v48  ;;  %5075 = vmatprep.subr.mxu1 %v4579_v49 }
 0x950   : > { %5065 = vmatmul.mubr.msk.f32.vlgmr.msra.gmra.mxu1 %vm594_vm2, %v2955_v46 }
 0x951   : > { %5083 = vmatprep.mubr.msk.f32.mxu1 %vm302_vm0, %v5460_v21  ;;  %5076 = vmatpush3.msra.mxu1 %v4579_v49  ;;  %v4578_v21 = vld [vmem:[%s6030_s1 + $0x130] sm:$0xff] }
 0x952   : > { %5077 = vmatprep.subr.mxu1 %v4578_v21 }
 0x953   : > { %5078 = vmatpush3.msra.mxu1 %v4578_v21 }
 0x954   : > { %5079 = vmatprep.subr.mxu1 %v4577_v50 }
 0x955   : > { %5080 = vmatpush3.msra.mxu1 %v4577_v50 }
 0x956   : > { %5081 = vmatprep.subr.mxu1 %v4576_v51 }
 0x957   : > { %5082 = vmatpush3.msra.mxu1 %v4576_v51 }
 0x958   : > { %5084 = vmatmul.mubr.msk.f32.vlgmr.msra.gmra.mxu1 %vm302_vm0, %v5466_v23  ;;  %5103 = vmatprep.subr.mxu1 %v4587_v3 }
 0x959   : > { %5086 = vmatprep.mubr.msk.f32.mxu1 %vm302_vm0, %v5474_v25  ;;  %5104 = vmatpush3.msra.mxu1 %v4587_v3 }
 0x95a   : > { %5105 = vmatprep.subr.mxu1 %v4586_v4 }
 0x95b   : > { %5106 = vmatpush3.msra.mxu1 %v4586_v4 }
 0x95c   : > { %5087 = vmatmul.mubr.msk.f32.gmra.mxu1 %vm302_vm0, %v5493_v28  ;;  %v4581_v28 = vld [vmem:[%s6030_s1 + $0x148] sm:$0xff]  ;;  %5107 = vmatprep.subr.mxu1 %v4585_v5 }
 0x95d   : > { %5111 = vmatprep.mubr.msk.f32.mxu1 %vm302_vm0, %v5510_v33  ;;  %5108 = vmatpush3.msra.mxu1 %v4585_v5 }
 0x95e   : > { %5109 = vmatprep.subr.mxu1 %v4584_v6 }
 0x95f   : > { %5110 = vmatpush3.msra.mxu1 %v4584_v6 }
 0x960   : > { %5112 = vmatmul.mubr.msk.f32.vlgmr.msra.gmra.mxu1 %vm302_vm0, %v5278_v7  ;;  %5127 = vmatprep.subr.mxu1 %v5342_v32 }
 0x961   : > { %5114 = vmatprep.mubr.msk.f32.mxu1 %vm302_vm0, %v5279_v8 }
 0x964   : > { %5115 = vmatmul.mubr.msk.f32.gmra.mxu1 %vm302_vm0, %v5528_v36  ;;  %v2332_v36 = vadd.f32 %v5765_v30, %v5792_v35 }
 0x965   : > { %5129 = vmatprep.mubr.msk.f32.mxu1 %vm5343_vm1, %v5342_v32 }
 0xa08   : > { %v3025_v52 = vpop.f32.mrf.mxu0 }
 0xa09   : > { %5069 = vmatprep.mubr.msk.f32.mxu0 %vm594_vm2, %v3025_v52 }
 0xa0a   : > { %v5051_v53 = vpop.f32.mrf.mxu0 }
 0xa0c   : > { %v3098_v55 = vpop.f32.mrf.mxu1 }
 0xa0d   : > { %v3171_v23 = vpop.f32.mrf.mxu0  ;;  %5070 = vmatmul.mubr.msk.f32.vlgmr.msra.gmra.mxu0 %vm594_vm2, %v3098_v55 }
 0xa0e   : > { %v5056_v25 = vpop.f32.mrf.mxu1  ;;  %5072 = vmatprep.mubr.msk.f32.mxu0 %vm594_vm2, %v3171_v23  ;;  %5090 = vmatpush3.msra.mxu0 %v4583_v48 }
 0xa0f   : > { %v5061_v33 = vpop.f32.mrf.mxu0  ;;  %5091 = vmatprep.subr.mxu0 %v4582_v58 }
 0xa10   : > { %v3244_v59 = vpop.f32.mrf.mxu1  ;;  %5092 = vmatpush3.msra.mxu0 %v4582_v58 }
 0xa11   : > { %5073 = vmatmul.mubr.msk.f32.gmra.mxu0 %vm594_vm2, %v3244_v59  ;;  %5093 = vmatprep.subr.mxu0 %v4581_v28 }
 0xa12   : > { %v5066_v62 = vpop.f32.mrf.mxu1  ;;  %5094 = vmatpush3.msra.mxu0 %v4581_v28  ;;  %5097 = vmatprep.mubr.msk.f32.mxu0 %vm302_vm0, %v5274_v63 }
 0xa13   : > { %5095 = vmatprep.subr.mxu0 %v4580_v61 }
 0xa14   : > { %5096 = vmatpush3.msra.mxu0 %v4580_v61 }
 0xa15   : > { %5098 = vmatmul.mubr.msk.f32.vlgmr.msra.gmra.mxu0 %vm302_vm0, %v5275_v0  ;;  %5117 = vmatprep.subr.mxu0 %v5342_v32 }
 0xa16   : > { %5100 = vmatprep.mubr.msk.f32.mxu0 %vm302_vm0, %v5276_v1 }
 0xa18   : > { %v5085_v12 = vpop.f32.mrf.mxu1 }
 0xa19   : > { %5101 = vmatmul.mubr.msk.f32.gmra.mxu0 %vm302_vm0, %v5277_v2 }
 0xa1a   : > { %5119 = vmatprep.mubr.msk.f32.mxu0 %vm5343_vm1, %v5342_v32  ;;  %v3430_v19 = vpop.f32.mrf.mxu1 }
 0xa1c   : > { %v5088_v24 = vpop.f32.mrf.mxu1 }
 0xa1e   : > { %v3440_v30 = vpop.f32.mrf.mxu1 }
 0xa20   : > { %v5113_v43 = vpop.f32.mrf.mxu1 }
 0xa22   : > { %v3600_v35 = vpop.f32.mrf.mxu1 }
 0xa24   : > { %v5942_v14 = vpop.f32.mrf.mxu1 }
 0xa26   : > { %v3610_v16 = vpop.f32.mrf.mxu1 }
 0xacd   : > { %v5071_v54 = vpop.f32.mrf.mxu0 }
 0xace   : > { %v5908_v57 = vadd.f32 %v5071_v54, %v2327_v56 }
 0xacf   : > { %v3328_v60 = vpop.f32.mrf.mxu0 }
 0xad0   : > { %v5912_v10 = vadd.f32 %v3328_v60, %v2322_v20 }
 0xad1   : > { %v5074_v11 = vpop.f32.mrf.mxu0 }
 0xad2   : > { %v5916_v22 = vadd.f32 %v5074_v11, %v2337_v9  ;;  %v4612_v11 = vld [vmem:[%s6031_s2 + $0x18] sm:$0xff] }
 0xad3   : > { %v3338_v18 = vpop.f32.mrf.mxu0 }
 0xad4   : > { %v5918_v34 = vadd.f32 %v3338_v18, %v2332_v36 }
 0xad5   : > { %v5099_v13 = vpop.f32.mrf.mxu0 }
 0xad7   : > { %v3515_v42 = vpop.f32.mrf.mxu0 }
 0xad8   : > { %5118 = vmatpush3.xpose.msk.msra.mxu0 %vm594_vm2, %v3515_v42 }
 0xad9   : > { %v5102_v27 = vpop.f32.mrf.mxu0  ;;  %5122 = vmatprep.subr.mxu0 %v5342_v32 }
 0xadb   : > { %v3525_v26 = vpop.f32.mrf.mxu0  ;;  %5120 = vmatmul.mubr.msk.f32.vlgmr.msra.gmra.mxu0 %vm594_vm2, %v3430_v19 }
 0xadc   : > { %5123 = vmatpush3.xpose.msk.msra.mxu0 %vm594_vm2, %v5099_v13  ;;  %5128 = vmatpush3.xpose.msk.msra.mxu1 %vm594_vm2, %v3525_v26  ;;  %v4617_v26 = vld [vmem:[%s6032_s3] ss:$0 sm:$0xff] }
 0xadd   : > { %5124 = vmatprep.mubr.msk.f32.mxu0 %vm5343_vm1, %v5342_v32  ;;  %5132 = vmatprep.subr.mxu0 %v5342_v32 }
 0xade   : > { %5137 = vmatprep.subr.mxu1 %v5342_v32 }
 0xadf   : > { %5125 = vmatmul.mubr.msk.f32.vlgmr.msra.gmra.mxu0 %vm594_vm2, %v5085_v12  ;;  %5130 = vmatmul.mubr.msk.f32.vlgmr.msra.gmra.mxu1 %vm594_vm2, %v3440_v30 }
 0xae0   : > { %5133 = vmatpush3.xpose.msk.msra.mxu0 %vm594_vm2, %v5102_v27  ;;  %5134 = vmatprep.mubr.msk.f32.mxu0 %vm5343_vm1, %v5342_v32 }
 0xae1   : > { %5142 = vmatprep.subr.mxu0 %v5342_v32  ;;  %5139 = vmatprep.mubr.msk.f32.mxu1 %vm5343_vm1, %v5342_v32 }
 0xae2   : > { %5138 = vmatpush3.msra.mxu1 %v3600_v35 }
 0xae3   : > { %5135 = vmatmul.mubr.msk.f32.vlgmr.msra.gmra.mxu0 %vm594_vm2, %v5088_v24  ;;  %5147 = vmatprep.subr.mxu1 %v5342_v32 }
 0xae4   : > { %5144 = vmatprep.mubr.msk.f32.mxu0 %vm5343_vm1, %v5342_v32  ;;  %5143 = vmatpush3.msra.mxu0 %v5113_v43 }
 0xae5   : > { %5152 = vmatprep.subr.mxu0 %v5342_v32 }
 0xb9b   : > { %v3691_v15 = vpop.f32.mrf.mxu0 }
 0xb9c   : > { %v3923_v17 = vsel %vm594_vm2, %v3691_v15, -inf }
 0xb9d   : > { %3924 = vmax.xlane.f32.xlu0 %v3923_v17  ;;  %v5121_v29 = vpop.f32.mrf.mxu0 }
 0xb9f   : > { %v3767_v31 = vpop.f32.mrf.mxu0  ;;  %v3843_v37 = vpop.f32.mrf.mxu1 }
 0xba0   : > { %v3929_v38 = vsel %vm594_vm2, %v3843_v37, -inf  ;;  %v3926_v39 = vsel %vm594_vm2, %v3767_v31, -inf }
 0xba1   : > { %3930 = vmax.xlane.f32.xlu0 %v3929_v38  ;;  %3927 = vmax.xlane.f32.xlu1 %v3926_v39  ;;  %v5126_v40 = vpop.f32.mrf.mxu0  ;;  %v5131_v41 = vpop.f32.mrf.mxu1 }
 0xba3   : > { %v3919_v44 = vpop.f32.mrf.mxu0 }
 0xba4   : > { %v3932_v45 = vsel %vm594_vm2, %v3919_v44, -inf }
 0xba5   : > { %3933 = vmax.xlane.f32.xlu1 %v3932_v45  ;;  %v5136_v46 = vpop.f32.mrf.mxu0 }
 0xc26   : > { %v3925_v47 = vpop.xlane.xlu0 %3924 }
 0xc27   : > { %v3935_v48 = vsub.f32 %v3691_v15, %v3925_v47 }
 0xc29   : > { %v3939_v49 = vmul.f32 1.442695, %v3935_v48 }
 0xc2a   : > { %v3931_v21 = vpop.xlane.xlu0 %3930  ;;  %v3928_v50 = vpop.xlane.xlu1 %3927 }
 0xc2b   : > { %5258 = vpow2.f32 %v3939_v49  ;;  %v3937_v51 = vsub.f32 %v3843_v37, %v3931_v21  ;;  %v3936_v52 = vsub.f32 %v3767_v31, %v3928_v50 }
 0xc2d   : > { %v3943_v53 = vmul.f32 1.442695, %v3937_v51  ;;  %v3941_v55 = vmul.f32 1.442695, %v3936_v52 }
 0xc2e   : > { %v3934_v58 = vpop.xlane.xlu1 %3933 }
 0xc2f   : > { %5260 = vpow2.f32 %v3943_v53  ;;  %v3938_v23 = vsub.f32 %v3919_v44, %v3934_v58 }
 0xc30   : > { %5262 = vpow2.f32 %v3941_v55 }
 0xc31   : > { %v3945_v25 = vmul.f32 1.442695, %v3938_v23 }
 0xc33   : > { %5264 = vpow2.f32 %v3945_v25 }
 0xc38   : > { %v5259_v28 = vpop.eup %5258 }
 0xc39   : > { %v3947_v33 = vsel %vm594_vm2, %v5259_v28, 0.0 }
 0xc3a   : > { %3948 = vadd.xlane.f32.xlu0 %v3947_v33 }
 0xc3c   : > { %v5261_v59 = vpop.eup %5260 }
 0xc3d   : > { %v5263_v61 = vpop.eup %5262  ;;  %v3953_v62 = vsel %vm594_vm2, %v5261_v59, 0.0 }
 0xc3e   : > { %3954 = vadd.xlane.f32.xlu0 %v3953_v62  ;;  %v3950_v63 = vsel %vm594_vm2, %v5263_v61, 0.0 }
 0xc3f   : > { %3951 = vadd.xlane.f32.xlu1 %v3950_v63 }
 0xc40   : > { %v5265_v0 = vpop.eup %5264 }
 0xc41   : > { %v3956_v1 = vsel %vm594_vm2, %v5265_v0, 0.0 }
 0xc43   : > { %3957 = vadd.xlane.f32.xlu1 %v3956_v1 }
 0xcc3   : > { %v3949_v2 = vpop.xlane.xlu0 %3948 }
 0xcc4   : > { %5266 = vrcp.f32 %v3949_v2 }
 0xcc7   : > { %v3955_v3 = vpop.xlane.xlu0 %3954 }
 0xcc8   : > { %5268 = vrcp.f32 %v3955_v3  ;;  %v3952_v4 = vpop.xlane.xlu1 %3951 }
 0xcc9   : > { %5270 = vrcp.f32 %v3952_v4 }
 0xccc   : > { %v3958_v5 = vpop.xlane.xlu1 %3957 }
 0xccd   : > { %5272 = vrcp.f32 %v3958_v5 }
 0xcd1   : > { %v5267_v6 = vpop.eup %5266 }
 0xcd2   : > { %v3963_v7 = vmul.f32 %v5267_v6, %v5259_v28 }
 0xcd4   : > { %5140 = vmatmul.mubr.msk.f32.vlgmr.msra.gmra.mxu1 %vm594_vm2, %v3963_v7 }
 0xcd5   : > { %v5269_v8 = vpop.eup %5268  ;;  %5148 = vmatpush3.msra.mxu1 %v3610_v16  ;;  %5149 = vmatprep.mubr.msk.f32.mxu1 %vm5343_vm1, %v5342_v32 }
 0xcd6   : > { %v5271_v56 = vpop.eup %5270  ;;  %v3965_v54 = vmul.f32 %v5269_v8, %v5261_v59  ;;  %5157 = vmatprep.subr.mxu1 %v4612_v11 }
 0xcd7   : > { %v3964_v20 = vmul.f32 %v5271_v56, %v5263_v61 }
 0xcd8   : > { %5150 = vmatmul.mubr.msk.f32.vlgmr.msra.gmra.mxu1 %vm594_vm2, %v3965_v54 }
 0xcd9   : > { %5145 = vmatmul.mubr.msk.f32.vlgmr.msra.gmra.mxu0 %vm594_vm2, %v3964_v20  ;;  %5158 = vmatpush3.msra.mxu1 %v4612_v11 }
 0xcda   : > { %v5273_v60 = vpop.eup %5272  ;;  %5153 = vmatpush3.msra.mxu0 %v5942_v14  ;;  %5154 = vmatprep.mubr.msk.f32.mxu0 %vm5343_vm1, %v5342_v32 }
 0xcdb   : > { %v3966_v9 = vmul.f32 %v5273_v60, %v5265_v0 }
 0xcdd   : > { %5155 = vmatmul.mubr.msk.f32.vlgmr.msra.gmra.mxu0 %vm594_vm2, %v3966_v9 }
 0xd94   : > { %v4036_v36 = vpop.f32.mrf.mxu1 }
 0xd95   : > { %5159 = vmatprep.mubr.msk.f32.mxu1 %vm594_vm2, %v4036_v36 }
 0xd96   : > { %v5141_v12 = vpop.f32.mrf.mxu1 }
 0xd98   : > { %v4182_v18 = vpop.f32.mrf.mxu1 }
 0xd99   : > { %v4109_v13 = vpop.f32.mrf.mxu0 }
 0xd9a   : > { %5160 = vmatmul.mubr.msk.f32.vlgmr.msra.gmra.mxu1 %vm594_vm2, %v4109_v13  ;;  %v5151_v19 = vpop.f32.mrf.mxu1 }
 0xd9b   : > { %v5146_v32 = vpop.f32.mrf.mxu0  ;;  %5162 = vmatprep.mubr.msk.f32.mxu1 %vm594_vm2, %v4182_v18 }
 0xd9d   : > { %v4255_v42 = vpop.f32.mrf.mxu0 }
 0xd9e   : > { %5163 = vmatmul.mubr.msk.f32.gmra.mxu1 %vm594_vm2, %v4255_v42 }
 0xd9f   : > { %v5156_v24 = vpop.f32.mrf.mxu0 }
 0xe5a   : > { %v5161_v27 = vpop.f32.mrf.mxu1 }
 0xe5b   : > { %v4359_v30 = vadd.f32 %v5161_v27, %v5908_v57 }
 0xe5c   : > { %v4339_v43 = vpop.f32.mrf.mxu1 }
 0xe5d   : > { %v4370_v35 = vadd.f32 %v4617_v26, %v4359_v30  ;;  %v4358_v14 = vadd.f32 %v4339_v43, %v5912_v10 }
 0xe5e   : > { %v5164_v15 = vpop.f32.mrf.mxu1 }
 0xe5f   : > { %4374 = vst.msk [vmem:[%s275_s10 + $0x8] sm:$0xff] %vm302_vm0, %v4370_v35  ;;  %v4369_v16 = vadd.f32 %v4617_v26, %v4358_v14  ;;  %v4361_v17 = vadd.f32 %v5164_v15, %v5916_v22 }
 0xe60   : > { %v4349_v29 = vpop.f32.mrf.mxu1 }
 0xe61   : > { %4373 = vst.msk [vmem:[%s275_s10] sm:$0xff] %vm302_vm0, %v4369_v16  ;;  %v4372_v57 = vadd.f32 %v4617_v26, %v4361_v17  ;;  %v4360_v31 = vadd.f32 %v4349_v29, %v5918_v34 }
 0xe63   : > { %4376 = vst.msk [vmem:[%s275_s10 + $0x18] sm:$0xff] %vm302_vm0, %v4372_v57  ;;  %v4371_v10 = vadd.f32 %v4617_v26, %v4360_v31 }
 0xe65   : > { %4375 = vst.msk [vmem:[%s275_s10 + $0x10] sm:$0xff] %vm302_vm0, %v4371_v10 }
 0xe66   : > { %5293 = shalt.err (!%p5290_p5)
}
 0xe67   : > { %s5294_s30 = scalar_lea.hbm %s5983_s22, 512  ;;  %s5298_s6 = scalar_lea.hbm %s6033_s4, 2048 }
 0xe68   : > { %p5295_p7 = scmp.ne.s32.totalorder %s5983_s22, %s5294_s30  ;;  %p5299_p11 = scmp.lt.s32.totalorder %s5983_s22, %s6033_s4 }
 0xe69   : > { %p5300_p12 = scmp.lt.s32.totalorder %s5298_s6, %s5294_s30 }
 0xe6a   : > { %p5296_p9 = pnand %p5295_p7, %p5410_p6 }
 0xe6b   : > { %p5301_p13 = por %p5300_p12, %p5299_p11 }
 0xe6c   : > { %p5297_p10 = pneg %p5296_p9 }
 0xe6e   : > { %p5302_p0 = pnand %p5301_p13, %p5297_p10 }
 0xe70   : > { %5305 = shalt.err (!%p5302_p0)
}
 0xe71   : > { %s5345_s10 = smov 128   ;;  %s5346_s12 = smov 8  }
 0xe72   : > { %5167 = dma.vmem_to_hbm [thread:$0]  (%p5410_p6), %s5985_s11, 512, %s5983_s22, %s4378_s19, %s5345_s10, %s5345_s10, %s5346_s12  }
 0xe73 PF: > { %p5173_p1 = scmp.ge.s32.totalorder %s5340_s18, 2  ;;  %s4406_s13 = sand.u32 1, %s5328_s15  }
 0xe74   : > { %s4407_s20 = scalar_lea.sflag [#allocation4], %s4406_s13 }
 0xe75   : > { %p5170_p2 = pnand %p5173_p1, %p5414_p8 }
 0xe77   : > { %p5171_p3 = pneg %p5170_p2 }
 0xe79   : > { %5323 = dma.done.wait (%p5171_p3), %s4407_s20, 512  }
 0xe7a   : > { %5325 = vsyncadd (%p5171_p3), %s4407_s20, 4294966784  ;;  %p14_p4 = scmp.ge.s32.totalorder %s5395_s21, 6   ;;  %s6036_s15 = smov %s5332_s16 }
 0xe7b   : > { %s6037_s16 = smov %s5336_s17  ;;  %s6038_s17 = smov %s5408_s24 }
 0xe7c   : > { %s6039_s18 = smov %s5395_s21  ;;  %16 = sbr.rel (!%p14_p4) target bundleno = 3 (0x3), region = 120 }
 0xe81   :  { %4412 = vsyncpa [#allocation4], 1 }
 0xe82   :  { %4414 = vsyncpa [#allocation4 + $0x1], 1 }

</bundles_post_ra>
